<compile_context>
chip_gen: v5e
topology: v5e:2x2
jax: 0.10.0
libtpu: 0.0.40
codegen_flags: <defaults>
</compile_context>

<pallas_src>
import jax
import jax.numpy as jnp
from jax.experimental import pallas as pl
from jax.experimental.pallas import tpu as pltpu


_LANES = 128
_MAX_TILE_CELLS = 1024      # per-tile mem block <= 1 MiB f32 at L=8, H=32; with
                            # double buffering this stays far inside every
                            # generation's scoped-VMEM default (incl. v7x).


def _pack_factor(hidden: int) -> int:
    """How many cells share one 128-lane output row."""
    if hidden < _LANES and _LANES % hidden == 0:
        return _LANES // hidden
    return 1


def _choose_tile(n_cells: int, pack: int, itemsize: int) -> int:
    """Cells per grid tile: a multiple of sublane*pack (so packed output rows stay
    native-tile aligned), as large as possible (<= _MAX_TILE_CELLS) to amortize
    grid-step overhead on single-TC v5e/v6e, while still giving >= 2 'parallel'
    tiles whenever the batch allows so both v7x TensorCores get work."""
    sublane = {4: 8, 2: 16, 1: 32}.get(itemsize, 8)
    align = sublane * pack
    half = max(align, n_cells // 2)
    tile = min(_MAX_TILE_CELLS, half)
    return max(align, (tile // align) * align)


# ---------------------------------------------------------------------------
# Kernel: one tile of C fused tree-cell invocations.
# ---------------------------------------------------------------------------
def _tree_cell_attn_kernel(q_ref, mem_ref, wblk_ref, bblk_ref, out_ref):
    # q_ref   : (C, H)        attention queries (type_to_predict_features)
    # mem_ref : (C, L, H)     per-cell memory tokens
    # wblk_ref: (P*H, P*H)    block-diagonal after_attn_lin.weight^T
    # bblk_ref: (1, P*H)      after_attn_lin.bias tiled P times
    # out_ref : (C//P, P*H)   lane-dense packed output (P cells per 128-lane row)
    pack = out_ref.shape[1] // q_ref.shape[1]
    rows = out_ref.shape[0]

    q = q_ref[...].astype(jnp.float32)                       # (C, H)
    mem = mem_ref[...].astype(jnp.float32)                   # (C, L, H)

    # scores[c, l] = <q[c], mem[c, l]>  -- VPU multiply + XLU lane-reduce;
    # avoids C tiny batched MXU pushes (see perf review).
    scores = jnp.sum(q[:, None, :] * mem, axis=-1)           # (C, L)

    # numerically-stable softmax; the divide runs on the EUP (approx reciprocal)
    m = jnp.max(scores, axis=-1, keepdims=True)
    e = jnp.exp(scores - m)
    inv_denom = pl.reciprocal(jnp.sum(e, axis=-1, keepdims=True), approx=True)
    probs = e * inv_denom                                    # (C, L)

    # weighted sum of memory tokens -- VPU multiply + XLU sublane-reduce
    attn = jnp.sum(probs[:, :, None] * mem, axis=1)          # (C, H)

    # Pack P cells per 128-lane row (cell p*rows + r -> row r, lane block p) so
    # after_attn_lin is a single dense (C/P, 128) x (128, 128) MXU matmul and
    # the output store is an unmasked full-lane vst.
    if pack > 1:
        attn = jnp.concatenate(
            [attn[p * rows:(p + 1) * rows, :] for p in range(pack)], axis=1)
    out = jnp.dot(attn, wblk_ref[...], preferred_element_type=jnp.float32)
    out_ref[...] = (out + bblk_ref[...]).astype(out_ref.dtype)
    # TODO(synk): lane-pack the q / memory_tokens loads as well (needs a
    # wrapper-side transpose of memory_tokens); only the store + linear are
    # packed here since the output store is the dominant layout lever.


# ---------------------------------------------------------------------------
# Wrappers
# ---------------------------------------------------------------------------
def prepare_after_attn_lin(lin_weight, lin_bias):
    """Hoisted ONCE at module-init time (not per decode step): a block-diagonal
    (P*H, P*H) copy of after_attn_lin.weight^T (P = cells packed per 128-lane
    row) and the bias tiled P times as a (1, P*H) row, both f32."""
    h = lin_weight.shape[0]
    pack = _pack_factor(h)
    wt = jnp.asarray(lin_weight, jnp.float32).T                       # (H, H)
    w_blk = jnp.kron(jnp.eye(pack, dtype=jnp.float32), wt)            # (P*H, P*H)
    b_blk = jnp.tile(jnp.asarray(lin_bias, jnp.float32), pack).reshape(1, pack * h)
    return w_blk, b_blk


def attend_and_project(queries, memory_tokens, w_blk, b_blk):
    """Fused dot-product attention + after_attn_lin for N cell invocations."""
    n, h = queries.shape
    _, l, _ = memory_tokens.shape
    pack = _pack_factor(h)
    itemsize = queries.dtype.itemsize
    tile = _choose_tile(n, pack, itemsize)
    num_tiles = -(-n // tile)
    n_pad = num_tiles * tile
    if n_pad != n:
        # Pad awkward batch sizes instead of one monolithic fallback tile so the
        # pipeline / v7x two-tile split is preserved; pad rows are dropped below.
        queries = jnp.pad(queries, ((0, n_pad - n), (0, 0)))
        memory_tokens = jnp.pad(memory_tokens, ((0, n_pad - n), (0, 0), (0, 0)))

    rows = tile // pack
    out_dtype = queries.dtype

    cost = pl.CostEstimate(
        flops=int(n_pad * 4 * l * h + (n_pad // pack) * 2 * (pack * h) ** 2),
        transcendentals=int(n_pad * (l + 1)),
        bytes_accessed=int(queries.size * itemsize
                           + memory_tokens.size * memory_tokens.dtype.itemsize
                           + w_blk.size * 4 + b_blk.size * 4
                           + n_pad * h * itemsize),
    )

    out_packed = pl.pallas_call(
        _tree_cell_attn_kernel,
        out_shape=jax.ShapeDtypeStruct((n_pad // pack, pack * h), out_dtype),
        grid=(num_tiles,),
        in_specs=[
            pl.BlockSpec((tile, h), lambda i: (i, 0)),
            pl.BlockSpec((tile, l, h), lambda i: (i, 0, 0)),
            pl.BlockSpec((pack * h, pack * h), lambda i: (0, 0)),  # weight resident
            pl.BlockSpec((1, pack * h), lambda i: (0, 0)),         # bias resident
        ],
        out_specs=pl.BlockSpec((rows, pack * h), lambda i: (i, 0)),
        compiler_params=pltpu.CompilerParams(
            dimension_semantics=("parallel",)),
        cost_estimate=cost,
    )(queries, memory_tokens, w_blk, b_blk)

    # Unpack: within tile t, lane-segment p of packed row r holds cell
    # t*tile + p*rows + r.  (Cheap wrapper-side reshape/transpose on the output.)
    out = out_packed.reshape(num_tiles, rows, pack, h)
    out = jnp.swapaxes(out, 1, 2).reshape(n_pad, h)
    return out[:n]


def tree_cell_only_attn(last_hidden,
                        type_to_predict_features,
                        parent_node_features,
                        parent_node_hidden,
                        memory_tokens,
                        root_node_features,
                        w_blk,
                        b_blk):
    """Mirrors the attention-only TreeRNNCell.forward.

    `type_to_predict_features` / `memory_tokens` may carry a single decode step
    ((B, H) / (B, L, H)) or MANY fused cell invocations (all tree nodes at one
    depth x beam elements) -- either way it is one pallas_call.
    Returns (attn_result, attn_result)."""
    n, h = type_to_predict_features.shape
    # Matches the PyTorch `if parent_node_features is None:` branch; the value
    # is unused downstream by this cell's forward (kept for fidelity, DCE'd).
    if parent_node_features is None:
        parent_node_features = jnp.broadcast_to(root_node_features[None, :], (n, h))
    # TODO(synk): nn.Dropout(p=0.1) is identity (eval/inference mode); train-mode
    # stochastic dropout would need pltpu.prng_seed / prng_random_bits in-kernel.
    attn_query = type_to_predict_features
    attn_result = attend_and_project(attn_query, memory_tokens, w_blk, b_blk)
    return attn_result, attn_result


if __name__ == "__main__":
    B, L, H = 2, 8, 32   # batch, memory-token sequence length, hidden_size

    key = jax.random.PRNGKey(0)
    k1, k2, k3, k4, k5, k6, k7, k8, k9, k10 = jax.random.split(key, 10)

    # Runtime inputs (single decode step, module-native shapes)
    last_hidden = jax.random.normal(k1, (B, H), jnp.float32)        # unused by this cell
    type_to_predict_features = jax.random.normal(k2, (B, H), jnp.float32)
    memory_tokens = jax.random.normal(k3, (B, L, H), jnp.float32)
    parent_node_features = None                                     # exercises root-feature path
    parent_node_hidden = jnp.zeros((B, H), jnp.float32)             # unused by this cell

    # Parameters: root_node_features (H,), after_attn_lin = Linear(H, H)
    root_node_features = jax.random.uniform(k4, (H,), jnp.float32)
    lin_weight = jax.random.normal(k5, (H, H), jnp.float32) * (1.0 / jnp.sqrt(H))
    lin_bias = jax.random.normal(k6, (H,), jnp.float32) * 0.01

    # Hoisted once (module init), not per decode step.
    w_blk, b_blk = prepare_after_attn_lin(lin_weight, lin_bias)

    def reference(q, mem):
        hp = jax.lax.Precision.HIGHEST
        scores = jnp.einsum('bh,blh->bl', q, mem, precision=hp)
        probs = jax.nn.softmax(scores, axis=-1)
        attn = jnp.einsum('bl,blh->bh', probs, mem, precision=hp)
        return jnp.dot(attn, lin_weight.T, precision=hp) + lin_bias

    TOL = dict(atol=2e-2, rtol=2e-2)   # covers the approximate EUP reciprocal

    # --- (1) single decode step at the module's native shapes ---
    out_pred, out_state = tree_cell_only_attn(
        last_hidden, type_to_predict_features, parent_node_features,
        parent_node_hidden, memory_tokens, root_node_features, w_blk, b_blk)
    jax.block_until_ready(out_pred)
    ref_small = reference(type_to_predict_features, memory_tokens)
    assert out_pred.shape == (B, H) and out_state.shape == (B, H)
    assert jnp.allclose(out_pred, ref_small, **TOL), "single-step mismatch"
    assert jnp.array_equal(out_pred, out_state)

    # --- (2) many fused cell invocations in ONE pallas_call; N=100 exercises
    #         zero-padding and the multi-tile "parallel" path (>= 2 tiles) ---
    N = 100
    q_big = jax.random.normal(k7, (N, H), jnp.float32)
    mem_big = jax.random.normal(k8, (N, L, H), jnp.float32)
    out_big, _ = tree_cell_only_attn(
        None, q_big, jnp.zeros((N, H), jnp.float32), None, mem_big,
        root_node_features, w_blk, b_blk)
    jax.block_until_ready(out_big)
    assert out_big.shape == (N, H)
    assert jnp.allclose(out_big, reference(q_big, mem_big), **TOL), "batched mismatch"

    # --- (3) bf16 inputs (halved HBM traffic on v6e/v7x); softmax/accum stay f32 ---
    Nb = 64
    q_bf = jax.random.normal(k9, (Nb, H), jnp.float32).astype(jnp.bfloat16)
    mem_bf = jax.random.normal(k10, (Nb, L, H), jnp.float32).astype(jnp.bfloat16)
    out_bf, _ = tree_cell_only_attn(
        None, q_bf, None, None, mem_bf, root_node_features, w_blk, b_blk)
    jax.block_until_ready(out_bf)
    ref_bf = reference(q_bf.astype(jnp.float32), mem_bf.astype(jnp.float32))
    assert out_bf.shape == (Nb, H) and out_bf.dtype == jnp.bfloat16
    assert jnp.allclose(out_bf.astype(jnp.float32), ref_bf,
                        atol=3e-2, rtol=3e-2), "bf16 mismatch"

    print("KERNEL_OK")
</pallas_src>

<mosaic_0001>
module attributes {stable_mosaic.version = 11 : i64} {
  func.func @_tree_cell_attn_kernel(%arg0: i32, %arg1: memref<32x32xf32, #tpu.memory_space<vmem>>, %arg2: memref<32x8x32xf32, #tpu.memory_space<vmem>>, %arg3: memref<128x128xf32, #tpu.memory_space<vmem>>, %arg4: memref<1x128xf32, #tpu.memory_space<vmem>>, %arg5: memref<8x128xf32, #tpu.memory_space<vmem>>) attributes {dimension_semantics = [#tpu.dimension_semantics<parallel>], iteration_bounds = array<i64: 1>, scalar_prefetch = 0 : i64, scratch_operands = 0 : i64, tpu.core_type = #tpu.core_type<tc>, window_params = [{transform_indices = @transform_0, window_bounds = array<i64: 32, 32>}, {transform_indices = @transform_1, window_bounds = array<i64: 32, 8, 32>}, {pipeline_mode = #tpu.pipeline_mode<synchronous>, transform_indices = @transform_2, window_bounds = array<i64: 128, 128>}, {pipeline_mode = #tpu.pipeline_mode<synchronous>, transform_indices = @transform_3, window_bounds = array<i64: 1, 128>}, {transform_indices = @transform_4, window_bounds = array<i64: 8, 128>}]} {
    %c0 = arith.constant 0 : index
    %c0_0 = arith.constant 0 : index
    %0 = vector.load %arg1[%c0, %c0_0] : memref<32x32xf32, #tpu.memory_space<vmem>>, vector<32x32xf32>
    %c0_1 = arith.constant 0 : index
    %c0_2 = arith.constant 0 : index
    %c0_3 = arith.constant 0 : index
    %1 = vector.load %arg2[%c0_1, %c0_2, %c0_3] : memref<32x8x32xf32, #tpu.memory_space<vmem>>, vector<32x8x32xf32>
    %2 = vector.shape_cast %0 : vector<32x32xf32> to vector<32x1x32xf32>
    %3 = vector.broadcast %2 : vector<32x1x32xf32> to vector<32x8x32xf32>
    %4 = arith.mulf %3, %1 : vector<32x8x32xf32>
    %cst = arith.constant dense<0.000000e+00> : vector<32x8xf32>
    %5 = vector.multi_reduction <add>, %4, %cst [2] : vector<32x8x32xf32> to vector<32x8xf32>
    %cst_4 = arith.constant dense<0xFF800000> : vector<32xf32>
    %6 = vector.multi_reduction <maximumf>, %5, %cst_4 [1] : vector<32x8xf32> to vector<32xf32>
    %7 = vector.shape_cast %6 : vector<32xf32> to vector<32x1xf32>
    %8 = vector.broadcast %7 : vector<32x1xf32> to vector<32x8xf32>
    %9 = arith.subf %5, %8 : vector<32x8xf32>
    %10 = math.exp %9 : vector<32x8xf32>
    %cst_5 = arith.constant dense<0.000000e+00> : vector<32xf32>
    %11 = vector.multi_reduction <add>, %10, %cst_5 [1] : vector<32x8xf32> to vector<32xf32>
    %12 = vector.shape_cast %11 : vector<32xf32> to vector<32x1xf32>
    %13 = tpu.reciprocal %12 {approx = true} : vector<32x1xf32> -> vector<32x1xf32>
    %14 = vector.broadcast %13 : vector<32x1xf32> to vector<32x8xf32>
    %15 = arith.mulf %10, %14 : vector<32x8xf32>
    %16 = vector.shape_cast %15 : vector<32x8xf32> to vector<32x8x1xf32>
    %17 = vector.broadcast %16 : vector<32x8x1xf32> to vector<32x8x32xf32>
    %18 = arith.mulf %17, %1 : vector<32x8x32xf32>
    %cst_6 = arith.constant dense<0.000000e+00> : vector<32x32xf32>
    %19 = vector.multi_reduction <add>, %18, %cst_6 [1] : vector<32x8x32xf32> to vector<32x32xf32>
    %20 = vector.extract_strided_slice %19 {offsets = [0, 0], sizes = [8, 32], strides = [1, 1]} : vector<32x32xf32> to vector<8x32xf32>
    %21 = vector.extract_strided_slice %19 {offsets = [8, 0], sizes = [8, 32], strides = [1, 1]} : vector<32x32xf32> to vector<8x32xf32>
    %22 = vector.extract_strided_slice %19 {offsets = [16, 0], sizes = [8, 32], strides = [1, 1]} : vector<32x32xf32> to vector<8x32xf32>
    %23 = vector.extract_strided_slice %19 {offsets = [24, 0], sizes = [8, 32], strides = [1, 1]} : vector<32x32xf32> to vector<8x32xf32>
    %24 = tpu.concatenate %20, %21, %22, %23 in 1 : vector<8x32xf32>, vector<8x32xf32>, vector<8x32xf32>, vector<8x32xf32> -> vector<8x128xf32>
    %c0_7 = arith.constant 0 : index
    %c0_8 = arith.constant 0 : index
    %25 = vector.load %arg3[%c0_7, %c0_8] : memref<128x128xf32, #tpu.memory_space<vmem>>, vector<128x128xf32>
    %cst_9 = arith.constant dense<0.000000e+00> : vector<8x128xf32>
    %26 = tpu.matmul %24, %25, %cst_9 {dimension_numbers = #tpu.dot_dimension_numbers<[1], [0], [0], [1], [0, 0, 1, 1], [], []>} : vector<8x128xf32>, vector<128x128xf32>, vector<8x128xf32> -> vector<8x128xf32>
    %c0_10 = arith.constant 0 : index
    %c0_11 = arith.constant 0 : index
    %27 = vector.load %arg4[%c0_10, %c0_11] : memref<1x128xf32, #tpu.memory_space<vmem>>, vector<1x128xf32>
    %28 = vector.broadcast %27 : vector<1x128xf32> to vector<8x128xf32>
    %29 = arith.addf %26, %28 : vector<8x128xf32>
    %c0_12 = arith.constant 0 : index
    %c0_13 = arith.constant 0 : index
    %30 = vector.load %arg5[%c0_12, %c0_13] : memref<8x128xf32, #tpu.memory_space<vmem>>, vector<8x128xf32>
    tpu.vector_store %arg5[%c0_12, %c0_13], %29 {strides = array<i32>} : memref<8x128xf32, #tpu.memory_space<vmem>>, vector<8x128xf32>,
    return
  }
  func.func @transform_0(%arg0: i32) -> (i32, i32) {
    %c0_i32 = arith.constant 0 : i32
    %c0_i32_0 = arith.constant 0 : i32
    return %arg0, %c0_i32 : i32, i32
  }
  func.func @transform_1(%arg0: i32) -> (i32, i32, i32) {
    %c0_i32 = arith.constant 0 : i32
    %c0_i32_0 = arith.constant 0 : i32
    %c0_i32_1 = arith.constant 0 : i32
    return %arg0, %c0_i32, %c0_i32_0 : i32, i32, i32
  }
  func.func @transform_2(%arg0: i32) -> (i32, i32) {
    %c0_i32 = arith.constant 0 : i32
    %c0_i32_0 = arith.constant 0 : i32
    %c0_i32_1 = arith.constant 0 : i32
    return %c0_i32, %c0_i32_0 : i32, i32
  }
  func.func @transform_3(%arg0: i32) -> (i32, i32) {
    %c0_i32 = arith.constant 0 : i32
    %c0_i32_0 = arith.constant 0 : i32
    %c0_i32_1 = arith.constant 0 : i32
    return %c0_i32, %c0_i32_0 : i32, i32
  }
  func.func @transform_4(%arg0: i32) -> (i32, i32) {
    %c0_i32 = arith.constant 0 : i32
    %c0_i32_0 = arith.constant 0 : i32
    return %arg0, %c0_i32 : i32, i32
  }
}

</mosaic_0001>

<bundles_post_ra>
// kernel: tpu_custom_call.1
= control target key start
LH: loop header
LB: loop body
LE: loop exit
PB: predicated region body
PF: predicated region fallthrough
CT: control target
= control target key end

     0   :  { %9 = vsyncpa [#allocation3], 0  ;;  %s2268_s0 = inlined_call_operand.hbm [shape: f32[32,32], index: 0, kind: input, shape index: {}]   ;;  %s2269_s1 = inlined_call_operand.hbm [shape: f32[32,8,32], index: 1, kind: input, shape index: {}]   ;;  %s2270_s2 = inlined_call_operand.hbm [shape: f32[128,128], index: 2, kind: input, shape index: {}]   ;;  %s2271_s3 = inlined_call_operand.vmem [shape: f32[1,128], index: 3, kind: input, shape index: {}]   ;;  %s2272_s4 = inlined_call_operand.hbm [shape: f32[8,128], index: 4, kind: output, shape index: {}]  }
   0x1   :  { %10 = vsyncpa [#allocation6], 0 }
   0x2   :  { %11 = vsyncpa [#allocation4], 0  ;;  %s29_s17 = sshll.u32 %s2269_s1, 4  ;;  %s1686_s18 = smov [#allocation5]   ;;  %s30_s17 = int_to_ptr.hbm [resolvable:$true] %s29_s17 }
   0x3   :  { %s31_s19 = sshll.u32 %s1686_s18, 4  ;;  %s16_s22 = sshll.u32 %s2268_s0, 4  ;;  %s32_s19 = int_to_ptr.vmem [resolvable:$true] %s31_s19  ;;  %s17_s22 = int_to_ptr.hbm [resolvable:$true] %s16_s22 }
   0x4   :  { %s1687_s23 = smov 128   ;;  %s1688_s24 = smov 8  }
   0x5   :  { %37 = dma.hbm_to_vmem [thread:$0]  %s30_s17, 4096, %s32_s19, [#allocation6], %s1687_s23, %s1687_s23, %s1688_s24  }
   0x6   :  { %s1689_s25 = smov [#allocation2]   ;;  %s42_s29 = sshll.u32 %s2270_s2, 4  ;;  %s43_s29 = int_to_ptr.hbm [resolvable:$true] %s42_s29 }
   0x7   :  { %s18_s26 = sshll.u32 %s1689_s25, 4  ;;  %s1690_s1 = smov [#allocation7]   ;;  %s19_s26 = int_to_ptr.vmem [resolvable:$true] %s18_s26 }
   0x8   :  { %24 = dma.hbm_to_vmem [thread:$0]  %s17_s22, 512, %s19_s26, [#allocation3], %s1687_s23, %s1687_s23, %s1688_s24  }
   0x9   :  { %s44_s30 = sshll.u32 %s1690_s1, 4  ;;  %s45_s30 = int_to_ptr.vmem [resolvable:$true] %s44_s30 }
   0xa   :  { %50 = dma.hbm_to_vmem [thread:$0]  %s43_s29, 2048, %s45_s30, [#allocation6], %s1687_s23, %s1687_s23, %s1688_s24  }
   0xb   :  { %1680 = dma.done.wait [#allocation3], 512  }
   0xc   :  { %1681 = vsyncadd [#allocation3], 4294966784 }
   0xd   :  { %1682 = dma.done.wait [#allocation6], 6144  }
   0xe   :  { %1683 = vsyncadd [#allocation6], 4294961152  ;;  %v65_v0 = vld [vmem:[#allocation2] sm:$0xff]  ;;  %vm229_vm0 = vcmask 261120   ;;  %v71_v7 = vld [vmem:[#allocation5 + $0x10] sm:$0xff]  ;;  %vm392_vm1 = vcmask 1041409  }
   0xf   :  { %v69_v1 = vld [vmem:[#allocation5] sm:$0xff]  ;;  %v133_v2 = vperm.slane %v65_v0, 0  ;;  %v108_v3 = vrot.slane %v65_v0, 4  ;;  %v106_v4 = vrot.slane %v65_v0, 2  ;;  %v105_v5 = vrot.slane %v65_v0, 1  ;;  %v70_v14 = vld [vmem:[#allocation5 + $0x8] sm:$0xff] }
  0x10   :  { %v73_v6 = vld [vmem:[#allocation5 + $0x20] sm:$0xff]  ;;  %v109_v8 = vrot.slane %v65_v0, 5  ;;  %v107_v9 = vrot.slane %v65_v0, 3  ;;  %v74_v20 = vld [vmem:[#allocation5 + $0x28] sm:$0xff]  ;;  %v72_v21 = vld [vmem:[#allocation5 + $0x18] sm:$0xff]  ;;  %v110_v25 = vrot.slane %v65_v0, 6 }
  0x11   :  { %v197_v10 = vmul.f32 %v133_v2, %v69_v1  ;;  %v137_v11 = vperm.slane %v108_v3, 0  ;;  %v135_v12 = vperm.slane %v106_v4, 0  ;;  %v134_v13 = vperm.slane %v105_v5, 0  ;;  %v66_v29 = vld [vmem:[#allocation2 + $0x8] sm:$0xff]  ;;  %v75_v32 = vld [vmem:[#allocation5 + $0x30] sm:$0xff]  ;;  %v77_v37 = vld [vmem:[#allocation5 + $0x40] sm:$0xff] }
  0x12   :  { %v138_v15 = vperm.slane %v109_v8, 0  ;;  %v136_v19 = vperm.slane %v107_v9, 0  ;;  %v111_v28 = vrot.slane %v65_v0, 7  ;;  %v139_v31 = vperm.slane %v110_v25, 0  ;;  %v76_v38 = vld [vmem:[#allocation5 + $0x38] sm:$0xff]  ;;  %v78_v47 = vld [vmem:[#allocation5 + $0x48] sm:$0xff] }
  0x13   :  { %v230_v16 = vsel %vm229_vm0, %v197_v10, 0.0  ;;  %v201_v17 = vmul.f32 %v137_v11, %v73_v6  ;;  %v199_v18 = vmul.f32 %v135_v12, %v71_v7  ;;  %v198_v24 = vmul.f32 %v134_v13, %v70_v14  ;;  %v80_v52 = vld [vmem:[#allocation5 + $0x58] sm:$0xff]  ;;  %v79_v53 = vld [vmem:[#allocation5 + $0x50] sm:$0xff]  ;;  %v81_v62 = vld [vmem:[#allocation5 + $0x60] sm:$0xff]  ;;  %s1692_s0 = smov 32   ;;  %s1693_s2 = smov 64  }
  0x14   :  { %231 = vadd.xlane.f32.xlu0 %v230_v16  ;;  %v202_v26 = vmul.f32 %v138_v15, %v74_v20  ;;  %v200_v27 = vmul.f32 %v136_v19, %v72_v21  ;;  %v141_v35 = vperm.slane %v66_v29, 0  ;;  %v140_v36 = vperm.slane %v111_v28, 0  ;;  %v83_v3 = vld [vmem:[#allocation5 + $0x70] sm:$0xff]  ;;  %v82_v4 = vld [vmem:[#allocation5 + $0x68] sm:$0xff]  ;;  %v84_v13 = vld [vmem:[#allocation5 + $0x78] sm:$0xff]  ;;  %s1694_s5 = smov 96  }
  0x15   :  { %v242_v22 = vsel %vm229_vm0, %v201_v17, 0.0  ;;  %v236_v23 = vsel %vm229_vm0, %v199_v18, 0.0  ;;  %v233_v30 = vsel %vm229_vm0, %v198_v24, 0.0  ;;  %v203_v39 = vmul.f32 %v139_v31, %v75_v32  ;;  %v67_v5 = vld [vmem:[#allocation2 + $0x10] sm:$0xff]  ;;  %v86_v18 = vld [vmem:[#allocation5 + $0x88] sm:$0xff]  ;;  %v85_v19 = vld [vmem:[#allocation5 + $0x80] sm:$0xff] }
  0x16   :  { %243 = vadd.xlane.f32.xlu2 %v242_v22  ;;  %237 = vadd.xlane.f32.xlu1 %v236_v23  ;;  %v245_v33 = vsel %vm229_vm0, %v202_v26, 0.0  ;;  %v239_v34 = vsel %vm229_vm0, %v200_v27, 0.0  ;;  %v112_v40 = vrot.slane %v66_v29, 1  ;;  %v205_v41 = vmul.f32 %v141_v35, %v77_v37  ;;  %v87_v28 = vld [vmem:[#allocation5 + $0x90] sm:$0xff]  ;;  %s1695_s8 = smov [#allocation8]   ;;  %s1455_s12 = sshll.u32 %s2272_s4, 4  ;;  %s1456_s12 = int_to_ptr.hbm [resolvable:$true] %s1455_s12 }
  0x17   :  { %v204_v42 = vmul.f32 %v140_v36, %v76_v38  ;;  %v114_v43 = vrot.slane %v66_v29, 3  ;;  %v113_v44 = vrot.slane %v66_v29, 2  ;;  %v248_v45 = vsel %vm229_vm0, %v203_v39, 0.0  ;;  %s1453_s9 = sshll.u32 %s1695_s8, 4  ;;  %s1454_s9 = int_to_ptr.vmem [resolvable:$true] %s1453_s9 }
  0x18   :  { %v142_v46 = vperm.slane %v112_v40, 0  ;;  %v254_v48 = vsel %vm229_vm0, %v205_v41, 0.0  ;;  %v115_v55 = vrot.slane %v66_v29, 4  ;;  %v117_v58 = vrot.slane %v66_v29, 6 }
  0x19   :  { %v251_v49 = vsel %vm229_vm0, %v204_v42, 0.0  ;;  %v144_v50 = vperm.slane %v114_v43, 0  ;;  %v143_v51 = vperm.slane %v113_v44, 0  ;;  %v116_v59 = vrot.slane %v66_v29, 5  ;;  %v90_v43 = vld [vmem:[#allocation5 + $0xa8] sm:$0xff] }
  0x1a   :  { %v206_v54 = vmul.f32 %v142_v46, %v78_v47  ;;  %v145_v61 = vperm.slane %v115_v55, 0  ;;  %v147_v1 = vperm.slane %v117_v58, 0  ;;  %v118_v7 = vrot.slane %v66_v29, 7  ;;  %v93_v58 = vld [vmem:[#allocation5 + $0xc0] sm:$0xff] }
  0x1b   :  { %v208_v56 = vmul.f32 %v144_v50, %v80_v52  ;;  %v207_v57 = vmul.f32 %v143_v51, %v79_v53  ;;  %v146_v2 = vperm.slane %v116_v59, 0  ;;  %v119_v10 = vrot.slane %v67_v5, 1  ;;  %v68_v50 = vld [vmem:[#allocation2 + $0x18] sm:$0xff] }
  0x1c   :  { %234 = vadd.xlane.f32.xlu0 %v233_v30  ;;  %v257_v60 = vsel %vm229_vm0, %v206_v54, 0.0  ;;  %v209_v6 = vmul.f32 %v145_v61, %v81_v62  ;;  %v211_v8 = vmul.f32 %v147_v1, %v83_v3  ;;  %v148_v12 = vperm.slane %v118_v7, 0 }
  0x1d   :  { %v263_v63 = vsel %vm229_vm0, %v208_v56, 0.0  ;;  %v260_v0 = vsel %vm229_vm0, %v207_v57, 0.0  ;;  %v210_v9 = vmul.f32 %v146_v2, %v82_v4  ;;  %v150_v16 = vperm.slane %v119_v10, 0 }
  0x1e   :  { %246 = vadd.xlane.f32.xlu2 %v245_v33  ;;  %240 = vadd.xlane.f32.xlu1 %v239_v34  ;;  %v266_v11 = vsel %vm229_vm0, %v209_v6, 0.0  ;;  %v272_v14 = vsel %vm229_vm0, %v211_v8, 0.0  ;;  %v149_v17 = vperm.slane %v67_v5, 0  ;;  %v212_v20 = vmul.f32 %v148_v12, %v84_v13  ;;  %v88_v33 = vld [vmem:[#allocation5 + $0x98] sm:$0xff]  ;;  %v89_v34 = vld [vmem:[#allocation5 + $0xa0] sm:$0xff] }
  0x1f   :  { %v269_v15 = vsel %vm229_vm0, %v210_v9, 0.0  ;;  %v120_v21 = vrot.slane %v67_v5, 2  ;;  %v214_v22 = vmul.f32 %v150_v16, %v86_v18  ;;  %v121_v24 = vrot.slane %v67_v5, 3  ;;  %v96_v9 = vld [vmem:[#allocation5 + $0xd8] sm:$0xff] }
  0x20   :  { %v213_v23 = vmul.f32 %v149_v17, %v85_v19  ;;  %v122_v25 = vrot.slane %v67_v5, 4  ;;  %v275_v26 = vsel %vm229_vm0, %v212_v20, 0.0  ;;  %v123_v36 = vrot.slane %v67_v5, 5 }
  0x21   :  { %v151_v27 = vperm.slane %v120_v21, 0  ;;  %v281_v29 = vsel %vm229_vm0, %v214_v22, 0.0  ;;  %v152_v31 = vperm.slane %v121_v24, 0  ;;  %v124_v39 = vrot.slane %v67_v5, 6 }
  0x22   :  { %v278_v30 = vsel %vm229_vm0, %v213_v23, 0.0  ;;  %v153_v32 = vperm.slane %v122_v25, 0  ;;  %v125_v40 = vrot.slane %v67_v5, 7  ;;  %v154_v42 = vperm.slane %v123_v36, 0  ;;  %v99_v23 = vld [vmem:[#allocation5 + $0xf0] sm:$0xff] }
  0x23   :  { %v215_v35 = vmul.f32 %v151_v27, %v87_v28  ;;  %v216_v37 = vmul.f32 %v152_v31, %v88_v33  ;;  %v155_v46 = vperm.slane %v124_v39, 0  ;;  %v126_v54 = vrot.slane %v68_v50, 1  ;;  %v100_v27 = vld [vmem:[#allocation5 + $0xf8] sm:$0xff] }
  0x24   :  { %249 = vadd.xlane.f32.xlu0 %v248_v45  ;;  %v217_v38 = vmul.f32 %v153_v32, %v89_v34  ;;  %v156_v47 = vperm.slane %v125_v40, 0  ;;  %v218_v51 = vmul.f32 %v154_v42, %v90_v43  ;;  %v127_v55 = vrot.slane %v68_v50, 2 }
  0x25   :  { %v284_v41 = vsel %vm229_vm0, %v215_v35, 0.0  ;;  %v287_v44 = vsel %vm229_vm0, %v216_v37, 0.0  ;;  %v157_v57 = vperm.slane %v68_v50, 0  ;;  %v158_v61 = vperm.slane %v126_v54, 0 }
  0x26   :  { %255 = vadd.xlane.f32.xlu2 %v254_v48  ;;  %252 = vadd.xlane.f32.xlu1 %v251_v49  ;;  %v290_v45 = vsel %vm229_vm0, %v217_v38, 0.0  ;;  %v91_v48 = vld [vmem:[#allocation5 + $0xb0] sm:$0xff]  ;;  %v92_v49 = vld [vmem:[#allocation5 + $0xb8] sm:$0xff]  ;;  %v293_v56 = vsel %vm229_vm0, %v218_v51, 0.0  ;;  %v159_v62 = vperm.slane %v127_v55, 0  ;;  %v128_v2 = vrot.slane %v68_v50, 3 }
  0x27   :  { %v219_v52 = vmul.f32 %v155_v46, %v91_v48  ;;  %v220_v53 = vmul.f32 %v156_v47, %v92_v49  ;;  %v221_v1 = vmul.f32 %v157_v57, %v93_v58  ;;  %v129_v5 = vrot.slane %v68_v50, 4 }
  0x28   :  { %v130_v6 = vrot.slane %v68_v50, 5  ;;  %v160_v8 = vperm.slane %v128_v2, 0  ;;  %v131_v17 = vrot.slane %v68_v50, 6  ;;  %v132_v20 = vrot.slane %v68_v50, 7 }
  0x29   :  { %v296_v59 = vsel %vm229_vm0, %v219_v52, 0.0  ;;  %v302_v7 = vsel %vm229_vm0, %v221_v1, 0.0  ;;  %v161_v12 = vperm.slane %v129_v5, 0  ;;  %v358_v33 = vlaneseq }
  0x2a   :  { %v162_v13 = vperm.slane %v130_v6, 0  ;;  %v224_v16 = vmul.f32 %v160_v8, %v96_v9  ;;  %v163_v22 = vperm.slane %v131_v17, 0  ;;  %vm394_vm2 = vcmask 1042434  }
  0x2b   :  { %v1768_v36 = vand.u32 127, %v358_v33  ;;  %vm396_vm3 = vcmask 1043459   ;;  %vm398_vm4 = vcmask 1044484   ;;  %vm400_vm5 = vcmask 1045509  }
  0x2c   :  { %258 = vadd.xlane.f32.xlu0 %v257_v60  ;;  %v299_v60 = vsel %vm229_vm0, %v220_v53, 0.0  ;;  %v311_v21 = vsel %vm229_vm0, %v224_v16, 0.0  ;;  %v227_v28 = vmul.f32 %v163_v22, %v99_v23  ;;  %vm402_vm6 = vcmask 1046534  }
  0x2d   :  { %vm404_vm7 = vcmask 1047559   ;;  %vm431_vm8 = vcmask 64512   ;;  %vm1403_vm9 = vcmask 523264   ;;  %vm1405_vm10 = vcmask 785408  }
  0x2e   :  { %264 = vadd.xlane.f32.xlu2 %v263_v63  ;;  %261 = vadd.xlane.f32.xlu1 %v260_v0  ;;  %v94_v63 = vld [vmem:[#allocation5 + $0xc8] sm:$0xff]  ;;  %v95_v0 = vld [vmem:[#allocation5 + $0xd0] sm:$0xff] }
  0x2f   :  { %v222_v3 = vmul.f32 %v158_v61, %v94_v63  ;;  %v223_v4 = vmul.f32 %v159_v62, %v95_v0 }
  0x31   :  { %v305_v10 = vsel %vm229_vm0, %v222_v3, 0.0 }
  0x34   :  { %267 = vadd.xlane.f32.xlu0 %v266_v11  ;;  %v308_v11 = vsel %vm229_vm0, %v223_v4, 0.0 }
  0x36   :  { %273 = vadd.xlane.f32.xlu2 %v272_v14  ;;  %270 = vadd.xlane.f32.xlu1 %v269_v15  ;;  %v97_v14 = vld [vmem:[#allocation5 + $0xe0] sm:$0xff]  ;;  %v98_v15 = vld [vmem:[#allocation5 + $0xe8] sm:$0xff] }
  0x37   :  { %v225_v18 = vmul.f32 %v161_v12, %v97_v14  ;;  %v226_v19 = vmul.f32 %v162_v13, %v98_v15 }
  0x39   :  { %v314_v24 = vsel %vm229_vm0, %v225_v18, 0.0  ;;  %v317_v25 = vsel %vm229_vm0, %v226_v19, 0.0 }
  0x3c   :  { %276 = vadd.xlane.f32.xlu0 %v275_v26  ;;  %v164_v26 = vperm.slane %v132_v20, 0 }
  0x3e   :  { %282 = vadd.xlane.f32.xlu2 %v281_v29  ;;  %279 = vadd.xlane.f32.xlu1 %v278_v30  ;;  %v228_v29 = vmul.f32 %v164_v26, %v100_v27  ;;  %v320_v30 = vsel %vm229_vm0, %v227_v28, 0.0 }
  0x40   :  { %v323_v31 = vsel %vm229_vm0, %v228_v29, 0.0 }
  0x44   :  { %285 = vadd.xlane.f32.xlu0 %v284_v41 }
  0x46   :  { %288 = vadd.xlane.f32.xlu1 %v287_v44  ;;  %291 = vadd.xlane.f32.xlu2 %v290_v45 }
  0x4c   :  { %294 = vadd.xlane.f32.xlu0 %v293_v56 }
  0x4e   :  { %297 = vadd.xlane.f32.xlu1 %v296_v59  ;;  %300 = vadd.xlane.f32.xlu2 %v299_v60 }
  0x54   :  { %303 = vadd.xlane.f32.xlu0 %v302_v7 }
  0x56   :  { %306 = vadd.xlane.f32.xlu1 %v305_v10  ;;  %309 = vadd.xlane.f32.xlu2 %v308_v11 }
  0x5c   :  { %312 = vadd.xlane.f32.xlu0 %v311_v21 }
  0x5e   :  { %315 = vadd.xlane.f32.xlu1 %v314_v24  ;;  %318 = vadd.xlane.f32.xlu2 %v317_v25 }
  0x64   :  { %321 = vadd.xlane.f32.xlu0 %v320_v30 }
  0x66   :  { %324 = vadd.xlane.f32.xlu1 %v323_v31 }
  0x87   :  { %v1762_v32 = vpop.xlane.xlu0 %231 }
  0x88   :  { %v360_v38 = vperm.slane %v1762_v32, %v1768_v36 }
  0x89   :  { %v1764_v34 = vpop.xlane.xlu2 %243  ;;  %v1766_v35 = vpop.xlane.xlu1 %237 }
  0x8a   :  { %v362_v40 = vperm.slane %v1766_v35, %v1768_v36  ;;  %v364_v46 = vperm.slane %v1764_v34, %v1768_v36 }
  0x8f   :  { %v1770_v37 = vpop.xlane.xlu0 %234 }
  0x90   :  { %v361_v39 = vperm.slane %v1770_v37, %v1768_v36 }
  0x91   :  { %v1778_v41 = vpop.xlane.xlu2 %246  ;;  %v1780_v42 = vpop.xlane.xlu1 %240 }
  0x92   :  { %v393_v43 = vsel %vm392_vm1, %v361_v39, %v360_v38  ;;  %v363_v44 = vperm.slane %v1780_v42, %v1768_v36  ;;  %v365_v48 = vperm.slane %v1778_v41, %v1768_v36 }
  0x93   :  { %v395_v45 = vsel %vm394_vm2, %v362_v40, %v393_v43 }
  0x94   :  { %v397_v47 = vsel %vm396_vm3, %v363_v44, %v395_v45 }
  0x95   :  { %v399_v49 = vsel %vm398_vm4, %v364_v46, %v397_v47 }
  0x96   :  { %v401_v54 = vsel %vm400_vm5, %v365_v48, %v399_v49 }
  0x97   :  { %v1792_v50 = vpop.xlane.xlu0 %249 }
  0x98   :  { %v366_v51 = vperm.slane %v1792_v50, %v1768_v36 }
  0x99   :  { %v1796_v52 = vpop.xlane.xlu2 %255  ;;  %v1798_v53 = vpop.xlane.xlu1 %252 }
  0x9a   :  { %v367_v55 = vperm.slane %v1798_v53, %v1768_v36  ;;  %v403_v56 = vsel %vm402_vm6, %v366_v51, %v401_v54  ;;  %v368_v60 = vperm.slane %v1796_v52, %v1768_v36 }
  0x9c   :  { %v405_v57 = vsel %vm404_vm7, %v367_v55, %v403_v56 }
  0x9d   :  { %v432_v58 = vsel %vm431_vm8, %v405_v57, -inf }
  0x9e   :  { %433 = vmax.xlane.f32.xlu2 %v432_v58 }
  0x9f   :  { %v1806_v59 = vpop.xlane.xlu0 %258 }
  0xa0   :  { %v369_v61 = vperm.slane %v1806_v59, %v1768_v36 }
  0xa1   :  { %v1812_v62 = vpop.xlane.xlu2 %264  ;;  %v1814_v63 = vpop.xlane.xlu1 %261 }
  0xa2   :  { %v370_v0 = vperm.slane %v1814_v63, %v1768_v36  ;;  %v406_v1 = vsel %vm392_vm1, %v369_v61, %v368_v60  ;;  %v371_v2 = vperm.slane %v1812_v62, %v1768_v36 }
  0xa4   :  { %v407_v3 = vsel %vm394_vm2, %v370_v0, %v406_v1 }
  0xa5   :  { %v408_v8 = vsel %vm396_vm3, %v371_v2, %v407_v3 }
  0xa7   :  { %v1822_v4 = vpop.xlane.xlu0 %267 }
  0xa8   :  { %v372_v5 = vperm.slane %v1822_v4, %v1768_v36 }
  0xa9   :  { %v1826_v6 = vpop.xlane.xlu2 %273  ;;  %v1828_v7 = vpop.xlane.xlu1 %270 }
  0xaa   :  { %v373_v9 = vperm.slane %v1828_v7, %v1768_v36  ;;  %v409_v10 = vsel %vm398_vm4, %v372_v5, %v408_v8  ;;  %v374_v11 = vperm.slane %v1826_v6, %v1768_v36 }
  0xac   :  { %v410_v12 = vsel %vm400_vm5, %v373_v9, %v409_v10 }
  0xad   :  { %v411_v17 = vsel %vm402_vm6, %v374_v11, %v410_v12 }
  0xaf   :  { %v1837_v13 = vpop.xlane.xlu0 %276 }
  0xb0   :  { %v375_v14 = vperm.slane %v1837_v13, %v1768_v36 }
  0xb1   :  { %v1841_v15 = vpop.xlane.xlu2 %282  ;;  %v1843_v16 = vpop.xlane.xlu1 %279 }
  0xb2   :  { %v412_v18 = vsel %vm404_vm7, %v375_v14, %v411_v17  ;;  %v377_v20 = vperm.slane %v1841_v15, %v1768_v36  ;;  %v376_v21 = vperm.slane %v1843_v16, %v1768_v36 }
  0xb3   :  { %v435_v19 = vsel %vm431_vm8, %v412_v18, -inf }
  0xb4   :  { %436 = vmax.xlane.f32.xlu0 %v435_v19  ;;  %v413_v26 = vsel %vm392_vm1, %v377_v20, %v376_v21  ;;  %v1691_v21 = vmov 0  }
  0xb5   :  { %1478 = vset.pattern.permute.xlu2 %v1691_v21  ;;  %1477 = vset.pattern.permute.xlu1 %v1691_v21 }
  0xb6   :  { %1476 = vset.pattern.permute.xlu0 %v1691_v21 }
  0xb7   :  { %v1852_v22 = vpop.xlane.xlu0 %285 }
  0xb8   :  { %v378_v23 = vperm.slane %v1852_v22, %v1768_v36 }
  0xb9   :  { %v1856_v24 = vpop.xlane.xlu1 %288  ;;  %v1858_v25 = vpop.xlane.xlu2 %291 }
  0xba   :  { %v379_v27 = vperm.slane %v1856_v24, %v1768_v36  ;;  %v414_v28 = vsel %vm394_vm2, %v378_v23, %v413_v26  ;;  %v380_v29 = vperm.slane %v1858_v25, %v1768_v36 }
  0xbc   :  { %v415_v30 = vsel %vm396_vm3, %v379_v27, %v414_v28 }
  0xbd   :  { %v416_v38 = vsel %vm398_vm4, %v380_v29, %v415_v30 }
  0xbf   :  { %v1867_v31 = vpop.xlane.xlu0 %294 }
  0xc0   :  { %v381_v33 = vperm.slane %v1867_v31, %v1768_v36 }
  0xc1   :  { %v1872_v39 = vpop.xlane.xlu1 %297  ;;  %v1874_v40 = vpop.xlane.xlu2 %300 }
  0xc2   :  { %v382_v43 = vperm.slane %v1872_v39, %v1768_v36  ;;  %v383_v44 = vperm.slane %v1874_v40, %v1768_v36  ;;  %v417_v45 = vsel %vm400_vm5, %v381_v33, %v416_v38 }
  0xc4   :  { %v418_v46 = vsel %vm402_vm6, %v382_v43, %v417_v45 }
  0xc5   :  { %v419_v47 = vsel %vm404_vm7, %v383_v44, %v418_v46 }
  0xc6   :  { %v438_v48 = vsel %vm431_vm8, %v419_v47, -inf }
  0xc7   :  { %439 = vmax.xlane.f32.xlu1 %v438_v48  ;;  %v1884_v49 = vpop.xlane.xlu0 %303 }
  0xc8   :  { %v384_v55 = vperm.slane %v1884_v49, %v1768_v36 }
  0xc9   :  { %v1886_v51 = vpop.xlane.xlu1 %306  ;;  %v1888_v54 = vpop.xlane.xlu2 %309 }
  0xca   :  { %v385_v56 = vperm.slane %v1886_v51, %v1768_v36  ;;  %v386_v57 = vperm.slane %v1888_v54, %v1768_v36 }
  0xcc   :  { %v420_v58 = vsel %vm392_vm1, %v385_v56, %v384_v55 }
  0xcd   :  { %v421_v1 = vsel %vm394_vm2, %v386_v57, %v420_v58 }
  0xcf   :  { %v1897_v60 = vpop.xlane.xlu0 %312 }
  0xd0   :  { %v387_v61 = vperm.slane %v1897_v60, %v1768_v36 }
  0xd1   :  { %v1901_v0 = vpop.xlane.xlu1 %315  ;;  %v1906_v3 = vpop.xlane.xlu2 %318 }
  0xd2   :  { %v388_v2 = vperm.slane %v1901_v0, %v1768_v36  ;;  %v422_v5 = vsel %vm396_vm3, %v387_v61, %v421_v1  ;;  %v389_v8 = vperm.slane %v1906_v3, %v1768_v36 }
  0xd4   :  { %v423_v9 = vsel %vm398_vm4, %v388_v2, %v422_v5 }
  0xd5   :  { %v424_v14 = vsel %vm400_vm5, %v389_v8, %v423_v9 }
  0xd7   :  { %v1912_v10 = vpop.xlane.xlu0 %321 }
  0xd8   :  { %v390_v11 = vperm.slane %v1912_v10, %v1768_v36 }
  0xd9   :  { %v1916_v12 = vpop.xlane.xlu1 %324 }
  0xda   :  { %v391_v17 = vperm.slane %v1916_v12, %v1768_v36  ;;  %v425_v18 = vsel %vm402_vm6, %v390_v11, %v424_v14 }
  0xdc   :  { %v426_v19 = vsel %vm404_vm7, %v391_v17, %v425_v18 }
  0xdd   :  { %v441_v20 = vsel %vm431_vm8, %v426_v19, -inf }
  0xde   :  { %442 = vmax.xlane.f32.xlu2 %v441_v20 }
 0x111   :  { %v434_v23 = vpop.xlane.xlu2 %433 }
 0x112   :  { %v448_v26 = vperm.slane %v434_v23, 0  ;;  %v449_v27 = vperm.slane %v434_v23, 1  ;;  %v450_v28 = vperm.slane %v434_v23, 2  ;;  %v455_v38 = vperm.slane %v434_v23, 7 }
 0x113   :  { %v452_v43 = vperm.slane %v434_v23, 4  ;;  %v451_v44 = vperm.slane %v434_v23, 3  ;;  %v454_v57 = vperm.slane %v434_v23, 6  ;;  %v453_v58 = vperm.slane %v434_v23, 5 }
 0x114   :  { %v512_v29 = vsub.f32 %v1762_v32, %v448_v26  ;;  %v513_v30 = vsub.f32 %v1770_v37, %v449_v27  ;;  %v514_v33 = vsub.f32 %v1766_v35, %v450_v28  ;;  %v519_v48 = vsub.f32 %v1798_v53, %v455_v38 }
 0x115   :  { %v516_v55 = vsub.f32 %v1764_v34, %v452_v43  ;;  %v515_v56 = vsub.f32 %v1780_v42, %v451_v44  ;;  %v518_v34 = vsub.f32 %v1792_v50, %v454_v57  ;;  %v517_v42 = vsub.f32 %v1778_v41, %v453_v58 }
 0x116   :  { %v544_v45 = vmul.f32 1.442695, %v512_v29  ;;  %v546_v46 = vmul.f32 1.442695, %v513_v30  ;;  %v548_v47 = vmul.f32 1.442695, %v514_v33 }
 0x117   :  { %v558_v32 = vmul.f32 1.442695, %v519_v48  ;;  %v552_v37 = vmul.f32 1.442695, %v516_v55  ;;  %v550_v61 = vmul.f32 1.442695, %v515_v56 }
 0x118   :  { %1480 = vpow2.f32 %v544_v45  ;;  %v556_v53 = vmul.f32 1.442695, %v518_v34  ;;  %v554_v5 = vmul.f32 1.442695, %v517_v42 }
 0x119   :  { %1482 = vpow2.f32 %v546_v46 }
 0x11a   :  { %1484 = vpow2.f32 %v548_v47 }
 0x11b   :  { %1486 = vpow2.f32 %v558_v32 }
 0x11c   :  { %1488 = vpow2.f32 %v552_v37 }
 0x11d   :  { %1490 = vpow2.f32 %v550_v61 }
 0x11e   :  { %v1930_v35 = vpop.eup %1480  ;;  %1492 = vpow2.f32 %v556_v53 }
 0x11f   :  { %v1932_v1 = vpop.eup %1482  ;;  %641 = vperm.xlu0 %1476, %v1930_v35   ;;  %1494 = vpow2.f32 %v554_v5 }
 0x120   :  { %v1935_v2 = vpop.eup %1484  ;;  %644 = vperm.xlu1 %1477, %v1932_v1  }
 0x121   :  { %647 = vperm.xlu2 %1478, %v1935_v2   ;;  %v1941_v8 = vpop.eup %1486 }
 0x122   :  { %v1943_v9 = vpop.eup %1488 }
 0x123   :  { %v1946_v14 = vpop.eup %1490 }
 0x124   :  { %v1953_v28 = vpop.eup %1492 }
 0x125   :  { %v1956_v38 = vpop.eup %1494 }
 0x127   :  { %662 = vperm.xlu0 %1476, %v1941_v8   ;;  %v437_v11 = vpop.xlane.xlu0 %436 }
 0x128   :  { %653 = vperm.xlu1 %1477, %v1943_v9   ;;  %v458_v50 = vperm.slane %v437_v11, 2  ;;  %v457_v17 = vperm.slane %v437_v11, 1  ;;  %v456_v18 = vperm.slane %v437_v11, 0  ;;  %v461_v21 = vperm.slane %v437_v11, 5 }
 0x129   :  { %650 = vperm.xlu2 %1478, %v1946_v14   ;;  %v460_v27 = vperm.slane %v437_v11, 4  ;;  %v459_v33 = vperm.slane %v437_v11, 3  ;;  %v463_v44 = vperm.slane %v437_v11, 7  ;;  %v462_v46 = vperm.slane %v437_v11, 6 }
 0x12a   :  { %v522_v41 = vsub.f32 %v1814_v63, %v458_v50  ;;  %v521_v19 = vsub.f32 %v1806_v59, %v457_v17  ;;  %v520_v20 = vsub.f32 %v1796_v52, %v456_v18  ;;  %v525_v30 = vsub.f32 %v1828_v7, %v461_v21 }
 0x12b   :  { %v524_v52 = vsub.f32 %v1822_v4, %v460_v27  ;;  %v523_v63 = vsub.f32 %v1812_v62, %v459_v33  ;;  %v527_v4 = vsub.f32 %v1837_v13, %v463_v44  ;;  %v526_v55 = vsub.f32 %v1826_v6, %v462_v46 }
 0x12c   :  { %v564_v23 = vmul.f32 1.442695, %v522_v41  ;;  %v562_v26 = vmul.f32 1.442695, %v521_v19  ;;  %v560_v29 = vmul.f32 1.442695, %v520_v20 }
 0x12d   :  { %v570_v59 = vmul.f32 1.442695, %v525_v30  ;;  %v568_v7 = vmul.f32 1.442695, %v524_v52  ;;  %v566_v45 = vmul.f32 1.442695, %v523_v63 }
 0x12e   :  { %1496 = vpow2.f32 %v564_v23  ;;  %v574_v57 = vmul.f32 1.442695, %v527_v4  ;;  %v572_v13 = vmul.f32 1.442695, %v526_v55 }
 0x12f   :  { %1498 = vpow2.f32 %v562_v26 }
 0x130   :  { %659 = vperm.xlu1 %1477, %v1953_v28   ;;  %1500 = vpow2.f32 %v560_v29 }
 0x131   :  { %656 = vperm.xlu2 %1478, %v1956_v38   ;;  %1502 = vpow2.f32 %v570_v59 }
 0x132   :  { %1504 = vpow2.f32 %v568_v7 }
 0x133   :  { %1506 = vpow2.f32 %v566_v45 }
 0x134   :  { %v1962_v43 = vpop.eup %1496  ;;  %1508 = vpow2.f32 %v574_v57 }
 0x135   :  { %671 = vperm.xlu0 %1476, %v1962_v43   ;;  %v1965_v47 = vpop.eup %1498 }
 0x136   :  { %v1967_v48 = vpop.eup %1500 }
 0x137   :  { %v1976_v32 = vpop.eup %1502 }
 0x138   :  { %668 = vperm.xlu1 %1477, %v1965_v47   ;;  %v1982_v34 = vpop.eup %1504 }
 0x139   :  { %665 = vperm.xlu2 %1478, %v1967_v48   ;;  %v1984_v53 = vpop.eup %1506 }
 0x13a   :  { %v1972_v62 = vpop.xlane.xlu1 %439  ;;  %v1991_v50 = vpop.eup %1508 }
 0x13b   :  { %v464_v56 = vperm.slane %v1972_v62, 0  ;;  %v466_v58 = vperm.slane %v1972_v62, 2  ;;  %v465_v61 = vperm.slane %v1972_v62, 1  ;;  %v467_v11 = vperm.slane %v1972_v62, 3 }
 0x13c   :  { %v470_v52 = vperm.slane %v1972_v62, 6  ;;  %v468_v59 = vperm.slane %v1972_v62, 4  ;;  %v469_v4 = vperm.slane %v1972_v62, 5 }
 0x13d   :  { %680 = vperm.xlu0 %1476, %v1976_v32   ;;  %v528_v37 = vsub.f32 %v1843_v16, %v464_v56  ;;  %v530_v6 = vsub.f32 %v1852_v22, %v466_v58  ;;  %v529_v16 = vsub.f32 %v1841_v15, %v465_v61  ;;  %v531_v22 = vsub.f32 %v1856_v24, %v467_v11 }
 0x13f   :  { %v576_v42 = vmul.f32 1.442695, %v528_v37  ;;  %v580_v5 = vmul.f32 1.442695, %v530_v6  ;;  %v578_v17 = vmul.f32 1.442695, %v529_v16 }
 0x140   :  { %677 = vperm.xlu1 %1477, %v1982_v34   ;;  %v582_v15 = vmul.f32 1.442695, %v531_v22 }
 0x141   :  { %674 = vperm.xlu2 %1478, %v1984_v53   ;;  %1510 = vpow2.f32 %v576_v42 }
 0x142   :  { %1512 = vpow2.f32 %v572_v13 }
 0x143   :  { %1514 = vpow2.f32 %v580_v5 }
 0x144   :  { %1516 = vpow2.f32 %v578_v17  ;;  %v471_v17 = vperm.slane %v1972_v62, 7 }
 0x145   :  { %1518 = vpow2.f32 %v582_v15 }
 0x147   :  { %v1993_v18 = vpop.eup %1510 }
 0x148   :  { %v1995_v41 = vpop.eup %1512  ;;  %686 = vperm.xlu1 %1477, %v1991_v50   ;;  %689 = vperm.xlu0 %1476, %v1993_v18  }
 0x149   :  { %683 = vperm.xlu2 %1478, %v1995_v41   ;;  %v2001_v19 = vpop.eup %1514 }
 0x14a   :  { %v2003_v20 = vpop.eup %1516 }
 0x14b   :  { %v2018_v45 = vpop.eup %1518 }
 0x150   :  { %695 = vperm.xlu1 %1477, %v2001_v19  }
 0x151   :  { %692 = vperm.xlu2 %1478, %v2003_v20   ;;  %v2007_v21 = vpop.xlane.xlu2 %442 }
 0x152   :  { %v472_v23 = vperm.slane %v2007_v21, 0  ;;  %v475_v26 = vperm.slane %v2007_v21, 3  ;;  %v473_v27 = vperm.slane %v2007_v21, 1  ;;  %v474_v33 = vperm.slane %v2007_v21, 2 }
 0x153   :  { %v478_v56 = vperm.slane %v2007_v21, 6  ;;  %v476_v58 = vperm.slane %v2007_v21, 4  ;;  %v477_v6 = vperm.slane %v2007_v21, 5  ;;  %v479_v62 = vperm.slane %v2007_v21, 7 }
 0x154   :  { %v536_v24 = vsub.f32 %v1884_v49, %v472_v23  ;;  %v539_v29 = vsub.f32 %v1897_v60, %v475_v26  ;;  %v537_v30 = vsub.f32 %v1886_v51, %v473_v27  ;;  %v538_v49 = vsub.f32 %v1888_v54, %v474_v33 }
 0x155   :  { %v534_v60 = vsub.f32 %v1872_v39, %v470_v52  ;;  %v532_v51 = vsub.f32 %v1858_v25, %v468_v59  ;;  %v533_v25 = vsub.f32 %v1867_v31, %v469_v4  ;;  %v542_v39 = vsub.f32 %v1912_v10, %v478_v56 }
 0x156   :  { %v592_v63 = vmul.f32 1.442695, %v536_v24  ;;  %v598_v44 = vmul.f32 1.442695, %v539_v29  ;;  %v594_v7 = vmul.f32 1.442695, %v537_v30  ;;  %v540_v61 = vsub.f32 %v1901_v0, %v476_v58 }
 0x157   :  { %v596_v46 = vmul.f32 1.442695, %v538_v49  ;;  %v588_v55 = vmul.f32 1.442695, %v534_v60  ;;  %v584_v37 = vmul.f32 1.442695, %v532_v51  ;;  %v541_v0 = vsub.f32 %v1906_v3, %v477_v6 }
 0x158   :  { %698 = vperm.xlu1 %1477, %v2018_v45   ;;  %1520 = vpow2.f32 %v592_v63  ;;  %v586_v42 = vmul.f32 1.442695, %v533_v25  ;;  %v604_v16 = vmul.f32 1.442695, %v542_v39  ;;  %v600_v11 = vmul.f32 1.442695, %v540_v61 }
 0x159   :  { %1522 = vpow2.f32 %v598_v44  ;;  %v535_v10 = vsub.f32 %v1874_v40, %v471_v17  ;;  %v602_v15 = vmul.f32 1.442695, %v541_v0  ;;  %v543_v3 = vsub.f32 %v1916_v12, %v479_v62 }
 0x15a   :  { %1524 = vpow2.f32 %v594_v7 }
 0x15b   :  { %1526 = vpow2.f32 %v596_v46  ;;  %v590_v26 = vmul.f32 1.442695, %v535_v10  ;;  %v606_v40 = vmul.f32 1.442695, %v543_v3 }
 0x15c   :  { %1528 = vpow2.f32 %v588_v55 }
 0x15d   :  { %1530 = vpow2.f32 %v584_v37 }
 0x15e   :  { %v2026_v57 = vpop.eup %1520  ;;  %1532 = vpow2.f32 %v586_v42 }
 0x15f   :  { %v2029_v13 = vpop.eup %1522  ;;  %713 = vperm.xlu0 %1476, %v2026_v57   ;;  %1534 = vpow2.f32 %v604_v16 }
 0x160   :  { %v2032_v54 = vpop.eup %1524  ;;  %722 = vperm.xlu1 %1477, %v2029_v13   ;;  %1536 = vpow2.f32 %v600_v11 }
 0x161   :  { %716 = vperm.xlu2 %1478, %v2032_v54   ;;  %v2040_v5 = vpop.eup %1526  ;;  %1538 = vpow2.f32 %v602_v15 }
 0x162   :  { %v2043_v22 = vpop.eup %1528  ;;  %1540 = vpow2.f32 %v590_v26 }
 0x163   :  { %v2046_v31 = vpop.eup %1530  ;;  %1542 = vpow2.f32 %v606_v40 }
 0x164   :  { %v2053_v23 = vpop.eup %1532 }
 0x165   :  { %v2055_v27 = vpop.eup %1534 }
 0x166   :  { %v2058_v24 = vpop.eup %1536 }
 0x167   :  { %719 = vperm.xlu0 %1476, %v2040_v5   ;;  %v2063_v29 = vpop.eup %1538 }
 0x168   :  { %707 = vperm.xlu1 %1477, %v2043_v22   ;;  %v2066_v21 = vpop.eup %1540 }
 0x169   :  { %701 = vperm.xlu2 %1478, %v2046_v31   ;;  %v2069_v30 = vpop.eup %1542 }
 0x16f   :  { %704 = vperm.xlu0 %1476, %v2053_v23  }
 0x170   :  { %731 = vperm.xlu1 %1477, %v2055_v27  }
 0x171   :  { %725 = vperm.xlu2 %1478, %v2058_v24  }
 0x177   :  { %728 = vperm.xlu0 %1476, %v2063_v29  }
 0x179   :  { %710 = vperm.xlu2 %1478, %v2066_v21  }
 0x17b   :  { %v648_v33 = vpop.permute.xlu2 %647 }
 0x17c   :  { %v738_v15 = vperm.slane %v648_v33, %v1768_v36 }
 0x17f   :  { %734 = vperm.xlu0 %1476, %v2069_v30  }
 0x183   :  { %v651_v52 = vpop.permute.xlu2 %650 }
 0x18b   :  { %v657_v59 = vpop.permute.xlu2 %656 }
 0x191   :  { %v642_v63 = vpop.permute.xlu0 %641 }
 0x192   :  { %v645_v12 = vpop.permute.xlu1 %644  ;;  %v736_v39 = vperm.slane %v642_v63, %v1768_v36 }
 0x193   :  { %v666_v7 = vpop.permute.xlu2 %665  ;;  %v737_v25 = vperm.slane %v645_v12, %v1768_v36  ;;  %v739_v12 = vperm.slane %v651_v52, %v1768_v36 }
 0x194   :  { %v744_v56 = vperm.slane %v666_v7, %v1768_v36 }
 0x195   :  { %v768_v0 = vsel %vm392_vm1, %v737_v25, %v736_v39 }
 0x196   :  { %v769_v3 = vsel %vm394_vm2, %v738_v15, %v768_v0 }
 0x199   :  { %v663_v49 = vpop.permute.xlu0 %662 }
 0x19a   :  { %v654_v44 = vpop.permute.xlu1 %653 }
 0x19b   :  { %v675_v51 = vpop.permute.xlu2 %674  ;;  %v740_v40 = vperm.slane %v654_v44, %v1768_v36  ;;  %v741_v44 = vperm.slane %v657_v59, %v1768_v36 }
 0x19c   :  { %v747_v16 = vperm.slane %v675_v51, %v1768_v36 }
 0x1a2   :  { %v660_v60 = vpop.permute.xlu1 %659 }
 0x1a3   :  { %v684_v61 = vpop.permute.xlu2 %683 }
 0x1a4   :  { %v750_v7 = vperm.slane %v684_v61, %v1768_v36  ;;  %v743_v61 = vperm.slane %v663_v49, %v1768_v36 }
 0x1a7   :  { %v672_v46 = vpop.permute.xlu0 %671 }
 0x1a8   :  { %v746_v58 = vperm.slane %v672_v46, %v1768_v36  ;;  %v770_v46 = vsel %vm396_vm3, %v739_v12, %v769_v3 }
 0x1aa   :  { %v669_v4 = vpop.permute.xlu1 %668 }
 0x1ab   :  { %v745_v55 = vperm.slane %v669_v4, %v1768_v36  ;;  %v693_v4 = vpop.permute.xlu2 %692 }
 0x1ac   :  { %v753_v49 = vperm.slane %v693_v4, %v1768_v36 }
 0x1ad   :  { %v775_v37 = vsel %vm392_vm1, %v745_v55, %v744_v56  ;;  %v771_v55 = vsel %vm398_vm4, %v740_v40, %v770_v46  ;;  %v742_v56 = vperm.slane %v660_v60, %v1768_v36 }
 0x1ae   :  { %v776_v42 = vsel %vm394_vm2, %v746_v58, %v775_v37  ;;  %v772_v25 = vsel %vm400_vm5, %v741_v44, %v771_v55 }
 0x1af   :  { %v681_v17 = vpop.permute.xlu0 %680  ;;  %v777_v10 = vsel %vm396_vm3, %v747_v16, %v776_v42  ;;  %v773_v39 = vsel %vm402_vm6, %v742_v56, %v772_v25 }
 0x1b0   :  { %v749_v26 = vperm.slane %v681_v17, %v1768_v36  ;;  %v774_v16 = vsel %vm404_vm7, %v743_v61, %v773_v39 }
 0x1b1   :  { %v800_v60 = vsel %vm431_vm8, %v774_v16, 0.0 }
 0x1b2   :  { %v678_v6 = vpop.permute.xlu1 %677 }
 0x1b3   :  { %v748_v11 = vperm.slane %v678_v6, %v1768_v36 }
 0x1b5   :  { %v778_v62 = vsel %vm398_vm4, %v748_v11, %v777_v10 }
 0x1b6   :  { %v779_v63 = vsel %vm400_vm5, %v749_v26, %v778_v62 }
 0x1b7   :  { %v780_v37 = vsel %vm402_vm6, %v750_v7, %v779_v63 }
 0x1ba   :  { %v687_v51 = vpop.permute.xlu1 %686  ;;  %v690_v11 = vpop.permute.xlu0 %689 }
 0x1bb   :  { %v751_v33 = vperm.slane %v687_v51, %v1768_v36  ;;  %v717_v6 = vpop.permute.xlu2 %716  ;;  %v752_v26 = vperm.slane %v690_v11, %v1768_v36 }
 0x1bc   :  { %v761_v61 = vperm.slane %v717_v6, %v1768_v36 }
 0x1bd   :  { %v781_v52 = vsel %vm404_vm7, %v751_v33, %v780_v37  ;;  %v782_v12 = vsel %vm392_vm1, %v753_v49, %v752_v26 }
 0x1be   :  { %v803_v58 = vsel %vm431_vm8, %v781_v52, 0.0 }
 0x1bf   :  { %804 = vadd.xlane.f32.xlu2 %v803_v58 }
 0x1c2   :  { %v696_v42 = vpop.permute.xlu1 %695 }
 0x1c3   :  { %v702_v17 = vpop.permute.xlu2 %701  ;;  %v754_v3 = vperm.slane %v696_v42, %v1768_v36 }
 0x1c4   :  { %v756_v46 = vperm.slane %v702_v17, %v1768_v36 }
 0x1c5   :  { %v783_v63 = vsel %vm394_vm2, %v754_v3, %v782_v12 }
 0x1c7   :  { %801 = vadd.xlane.f32.xlu2 %v800_v60 }
 0x1ca   :  { %v699_v59 = vpop.permute.xlu1 %698 }
 0x1cb   :  { %v726_v15 = vpop.permute.xlu2 %725  ;;  %v755_v40 = vperm.slane %v699_v59, %v1768_v36 }
 0x1cc   :  { %v764_v26 = vperm.slane %v726_v15, %v1768_v36 }
 0x1cd   :  { %v784_v7 = vsel %vm396_vm3, %v755_v40, %v783_v63 }
 0x1ce   :  { %v785_v44 = vsel %vm398_vm4, %v756_v46, %v784_v7 }
 0x1d1   :  { %v714_v0 = vpop.permute.xlu0 %713 }
 0x1d2   :  { %v723_v10 = vpop.permute.xlu1 %722  ;;  %v760_v52 = vperm.slane %v714_v0, %v1768_v36 }
 0x1d3   :  { %v711_v33 = vpop.permute.xlu2 %710  ;;  %v763_v17 = vperm.slane %v723_v10, %v1768_v36 }
 0x1d4   :  { %v759_v4 = vperm.slane %v711_v33, %v1768_v36  ;;  %v789_v60 = vsel %vm392_vm1, %v761_v61, %v760_v52 }
 0x1d9   :  { %v720_v62 = vpop.permute.xlu0 %719 }
 0x1da   :  { %v708_v51 = vpop.permute.xlu1 %707  ;;  %v762_v25 = vperm.slane %v720_v62, %v1768_v36 }
 0x1db   :  { %v758_v37 = vperm.slane %v708_v51, %v1768_v36 }
 0x1dc   :  { %v790_v11 = vsel %vm394_vm2, %v762_v25, %v789_v60 }
 0x1dd   :  { %v791_v0 = vsel %vm396_vm3, %v763_v17, %v790_v11 }
 0x1de   :  { %v792_v6 = vsel %vm398_vm4, %v764_v26, %v791_v0 }
 0x1e1   :  { %v705_v55 = vpop.permute.xlu0 %704 }
 0x1e2   :  { %v757_v56 = vperm.slane %v705_v55, %v1768_v36  ;;  %v732_v3 = vpop.permute.xlu1 %731 }
 0x1e3   :  { %v766_v40 = vperm.slane %v732_v3, %v1768_v36 }
 0x1e4   :  { %v786_v58 = vsel %vm400_vm5, %v757_v56, %v785_v44 }
 0x1e5   :  { %v787_v39 = vsel %vm402_vm6, %v758_v37, %v786_v58 }
 0x1e6   :  { %v788_v42 = vsel %vm404_vm7, %v759_v4, %v787_v39 }
 0x1e7   :  { %v806_v16 = vsel %vm431_vm8, %v788_v42, 0.0 }
 0x1e8   :  { %807 = vadd.xlane.f32.xlu1 %v806_v16 }
 0x1e9   :  { %v729_v59 = vpop.permute.xlu0 %728 }
 0x1ea   :  { %v765_v62 = vperm.slane %v729_v59, %v1768_v36 }
 0x1ec   :  { %v793_v49 = vsel %vm400_vm5, %v765_v62, %v792_v6 }
 0x1ed   :  { %v794_v7 = vsel %vm402_vm6, %v766_v40, %v793_v49 }
 0x1f1   :  { %v735_v12 = vpop.permute.xlu0 %734 }
 0x1f2   :  { %v767_v63 = vperm.slane %v735_v12, %v1768_v36 }
 0x1f4   :  { %v795_v10 = vsel %vm404_vm7, %v767_v63, %v794_v7 }
 0x1f5   :  { %v809_v51 = vsel %vm431_vm8, %v795_v10, 0.0 }
 0x1f6   :  { %810 = vadd.xlane.f32.xlu0 %v809_v51 }
 0x232   :  { %v805_v46 = vpop.xlane.xlu2 %804 }
 0x233   :  { %1544 = vrcp.f32 %v805_v46 }
 0x239   :  { %v2136_v15 = vpop.eup %1544 }
 0x23a   :  { %v829_v33 = vperm.slane %v2136_v15, 1  ;;  %v828_v55 = vperm.slane %v2136_v15, 0  ;;  %v830_v56 = vperm.slane %v2136_v15, 2  ;;  %v831_v4 = vperm.slane %v2136_v15, 3  ;;  %v802_v10 = vpop.xlane.xlu2 %801 }
 0x23b   :  { %v832_v59 = vperm.slane %v2136_v15, 4  ;;  %v833_v26 = vperm.slane %v2136_v15, 5  ;;  %v834_v49 = vperm.slane %v2136_v15, 6  ;;  %v835_v63 = vperm.slane %v2136_v15, 7 }
 0x23c   :  { %v893_v37 = vmul.f32 %v1965_v47, %v829_v33  ;;  %v892_v36 = vmul.f32 %v1967_v48, %v828_v55  ;;  %v894_v44 = vmul.f32 %v1962_v43, %v830_v56  ;;  %v895_v52 = vmul.f32 %v1984_v53, %v831_v4 }
 0x23d   :  { %v897_v6 = vmul.f32 %v1976_v32, %v833_v26  ;;  %v898_v12 = vmul.f32 %v1995_v41, %v834_v49 }
 0x23e   :  { %963 = vperm.xlu2 %1478, %v893_v37   ;;  %958 = vperm.xlu1 %1477, %v892_v36  }
 0x23f   :  { %968 = vperm.xlu0 %1476, %v894_v44  }
 0x246   :  { %973 = vperm.xlu2 %1478, %v895_v52  }
 0x25b   :  { %v808_v58 = vpop.xlane.xlu1 %807 }
 0x25c   :  { %1546 = vrcp.f32 %v808_v58 }
 0x262   :  { %v1547_v25 = vpop.eup %1546 }
 0x263   :  { %v836_v39 = vperm.slane %v1547_v25, 0  ;;  %v837_v61 = vperm.slane %v1547_v25, 1  ;;  %v838_v48 = vperm.slane %v1547_v25, 2  ;;  %v839_v62 = vperm.slane %v1547_v25, 3 }
 0x264   :  { %v842_v51 = vperm.slane %v1547_v25, 6  ;;  %v843_v46 = vperm.slane %v1547_v25, 7 }
 0x265   :  { %v900_v42 = vmul.f32 %v1993_v18, %v836_v39  ;;  %v901_v47 = vmul.f32 %v2003_v20, %v837_v61  ;;  %v902_v16 = vmul.f32 %v2001_v19, %v838_v48  ;;  %v896_v18 = vmul.f32 %v1982_v34, %v832_v59 }
 0x266   :  { %v903_v3 = vmul.f32 %v2018_v45, %v839_v62  ;;  %v841_v45 = vperm.slane %v1547_v25, 5  ;;  %v906_v33 = vmul.f32 %v2043_v22, %v842_v51 }
 0x267   :  { %998 = vperm.xlu1 %1477, %v900_v42   ;;  %1003 = vperm.xlu0 %1476, %v901_v47  }
 0x268   :  { %v905_v7 = vmul.f32 %v2053_v23, %v841_v45  ;;  %v1558_v45 = vld [vmem:[#allocation5 + $0x88] sm:$0xff] }
 0x269   :  { %v811_v43 = vpop.xlane.xlu0 %810 }
 0x26a   :  { %1548 = vrcp.f32 %v811_v43  ;;  %v1552_v43 = vld [vmem:[#allocation5 + $0x40] sm:$0xff] }
 0x26b   :  { %1550 = vrcp.f32 %v802_v10 }
 0x26f   :  { %1008 = vperm.xlu1 %1477, %v902_v16  }
 0x270   :  { %v1549_v60 = vpop.eup %1548 }
 0x271   :  { %v845_v53 = vperm.slane %v1549_v60, 1  ;;  %v844_v11 = vperm.slane %v1549_v60, 0  ;;  %v846_v20 = vperm.slane %v1549_v60, 2  ;;  %v1551_v15 = vpop.eup %1550  ;;  %v851_v23 = vperm.slane %v1549_v60, 7 }
 0x272   :  { %v850_v55 = vperm.slane %v1549_v60, 6  ;;  %v820_v56 = vperm.slane %v1551_v15, 0  ;;  %v821_v22 = vperm.slane %v1551_v15, 1  ;;  %v823_v44 = vperm.slane %v1551_v15, 3 }
 0x273   :  { %v909_v17 = vmul.f32 %v2032_v54, %v845_v53  ;;  %v908_v0 = vmul.f32 %v2026_v57, %v844_v11  ;;  %v910_v19 = vmul.f32 %v2040_v5, %v846_v20  ;;  %v847_v54 = vperm.slane %v1549_v60, 3 }
 0x274   :  { %v840_v57 = vperm.slane %v1547_v25, 4  ;;  %v848_v5 = vperm.slane %v1549_v60, 4  ;;  %v914_v37 = vmul.f32 %v2055_v27, %v850_v55  ;;  %v884_v36 = vmul.f32 %v1930_v35, %v820_v56 }
 0x275   :  { %1043 = vperm.xlu2 %1478, %v909_v17   ;;  %1038 = vperm.xlu0 %1476, %v908_v0   ;;  %v911_v34 = vmul.f32 %v2029_v13, %v847_v54  ;;  %v899_v13 = vmul.f32 %v1991_v50, %v835_v63  ;;  %v915_v50 = vmul.f32 %v2069_v30, %v851_v23  ;;  %v825_v30 = vperm.slane %v1551_v15, 5  ;;  %v1555_v0 = vld [vmem:[#allocation5 + $0x58] sm:$0xff] }
 0x276   :  { %v904_v40 = vmul.f32 %v2046_v31, %v840_v57  ;;  %v912_v32 = vmul.f32 %v2058_v24, %v848_v5  ;;  %v849_v31 = vperm.slane %v1549_v60, 5  ;;  %v907_v24 = vmul.f32 %v2066_v21, %v843_v46 }
 0x277   :  { %978 = vperm.xlu1 %1477, %v896_v18   ;;  %v885_v21 = vmul.f32 %v1932_v1, %v821_v22  ;;  %v887_v52 = vmul.f32 %v1946_v14, %v823_v44  ;;  %v824_v58 = vperm.slane %v1551_v15, 4  ;;  %v826_v27 = vperm.slane %v1551_v15, 6 }
 0x278   :  { %v913_v41 = vmul.f32 %v2063_v29, %v849_v31  ;;  %v822_v29 = vperm.slane %v1551_v15, 2  ;;  %v889_v25 = vmul.f32 %v1956_v38, %v825_v30  ;;  %v1553_v38 = vld [vmem:[#allocation5 + $0x48] sm:$0xff]  ;;  %v1559_v31 = vld [vmem:[#allocation5 + $0xd0] sm:$0xff] }
 0x279   :  { %v888_v35 = vmul.f32 %v1943_v9, %v824_v58  ;;  %v890_v39 = vmul.f32 %v1953_v28, %v826_v27  ;;  %v1554_v9 = vld [vmem:[#allocation5 + $0x50] sm:$0xff] }
 0x27a   :  { %v886_v4 = vmul.f32 %v1935_v2, %v822_v29  ;;  %v827_v2 = vperm.slane %v1551_v15, 7 }
 0x27c   :  { %v891_v1 = vmul.f32 %v1941_v8, %v827_v2 }
 0x27d   :  { %1048 = vperm.xlu2 %1478, %v910_v19   ;;  %1013 = vperm.xlu0 %1476, %v903_v3   ;;  %v1556_v3 = vld [vmem:[#allocation5 + $0xc8] sm:$0xff] }
 0x27f   :  { %983 = vperm.xlu1 %1477, %v897_v6  }
 0x285   :  { %1053 = vperm.xlu2 %1478, %v911_v34   ;;  %1018 = vperm.xlu0 %1476, %v904_v40  }
 0x287   :  { %988 = vperm.xlu1 %1477, %v898_v12   ;;  %v1557_v12 = vld [vmem:[#allocation5 + $0x80] sm:$0xff] }
 0x28d   :  { %1058 = vperm.xlu2 %1478, %v912_v32   ;;  %1023 = vperm.xlu0 %1476, %v905_v7  }
 0x28f   :  { %993 = vperm.xlu1 %1477, %v899_v13  }
 0x295   :  { %1063 = vperm.xlu2 %1478, %v913_v41   ;;  %1028 = vperm.xlu0 %1476, %v906_v33  }
 0x297   :  { %1033 = vperm.xlu1 %1477, %v907_v24  }
 0x298   :  { %v964_v61 = vpop.permute.xlu2 %963 }
 0x299   :  { %v1085_v53 = vmul.f32 %v1553_v38, %v964_v61  ;;  %v1561_v61 = vld [vmem:[#allocation5 + $0xd8] sm:$0xff] }
 0x29b   :  { %v1171_v17 = vsel %vm229_vm0, %v1085_v53, 0.0 }
 0x29c   :  { %v1172_v62 = vrot.slane %v1171_v17, 4 }
 0x29d   :  { %1073 = vperm.xlu2 %1478, %v915_v50   ;;  %1068 = vperm.xlu0 %1476, %v914_v37  }
 0x29e   :  { %v1173_v40 = vadd.f32 %v1172_v62, %v1171_v17 }
 0x29f   :  { %918 = vperm.xlu1 %1477, %v884_v36  }
 0x2a0   :  { %v974_v42 = vpop.permute.xlu2 %973  ;;  %v1174_v46 = vrot.slane %v1173_v40, 2 }
 0x2a1   :  { %v1087_v8 = vmul.f32 %v1555_v0, %v974_v42 }
 0x2a2   :  { %v1175_v44 = vadd.f32 %v1174_v46, %v1173_v40 }
 0x2a3   :  { %v1185_v57 = vsel %vm229_vm0, %v1087_v8, 0.0 }
 0x2a4   :  { %v1186_v32 = vrot.slane %v1185_v57, 4  ;;  %v1176_v2 = vrot.slane %v1175_v44, 1 }
 0x2a5   :  { %928 = vperm.xlu2 %1478, %v886_v4   ;;  %923 = vperm.xlu0 %1476, %v885_v21  }
 0x2a6   :  { %v1187_v23 = vadd.f32 %v1186_v32, %v1185_v57  ;;  %v1177_v0 = vadd.f32 %v1176_v2, %v1175_v44 }
 0x2a7   :  { %933 = vperm.xlu1 %1477, %v887_v52  }
 0x2a8   :  { %v1188_v21 = vrot.slane %v1187_v23, 2 }
 0x2ad   :  { %943 = vperm.xlu2 %1478, %v889_v25   ;;  %938 = vperm.xlu0 %1476, %v888_v35   ;;  %v1560_v35 = vld [vmem:[#allocation5 + $0x60] sm:$0xff] }
 0x2af   :  { %948 = vperm.xlu1 %1477, %v890_v39  }
 0x2b0   :  { %v959_v47 = vpop.permute.xlu1 %958 }
 0x2b1   :  { %v1084_v48 = vmul.f32 %v1552_v43, %v959_v47  ;;  %v969_v16 = vpop.permute.xlu0 %968  ;;  %v1189_v47 = vadd.f32 %v1188_v21, %v1187_v23  ;;  %v1568_v21 = vld [vmem:[#allocation5 + $0x70] sm:$0xff] }
 0x2b2   :  { %v1086_v11 = vmul.f32 %v1554_v9, %v969_v16 }
 0x2b3   :  { %v1164_v28 = vsel %vm229_vm0, %v1084_v48, 0.0 }
 0x2b4   :  { %v1165_v18 = vrot.slane %v1164_v28, 4  ;;  %v1178_v20 = vsel %vm229_vm0, %v1086_v11, 0.0 }
 0x2b5   :  { %953 = vperm.xlu0 %1476, %v891_v1   ;;  %v1179_v19 = vrot.slane %v1178_v20, 4 }
 0x2b6   :  { %v1166_v49 = vadd.f32 %v1165_v18, %v1164_v28  ;;  %v1563_v28 = vld [vmem:[#allocation5 + $0x68] sm:$0xff] }
 0x2b7   :  { %v1180_v7 = vadd.f32 %v1179_v19, %v1178_v20  ;;  %v1190_v20 = vrot.slane %v1189_v47, 1 }
 0x2b8   :  { %v1167_v13 = vrot.slane %v1166_v49, 2 }
 0x2b9   :  { %v1181_v55 = vrot.slane %v1180_v7, 2 }
 0x2ba   :  { %v1168_v56 = vadd.f32 %v1167_v13, %v1166_v49 }
 0x2bb   :  { %v1182_v52 = vadd.f32 %v1181_v55, %v1180_v7 }
 0x2bc   :  { %v1169_v30 = vrot.slane %v1168_v56, 1 }
 0x2bd   :  { %v1183_v43 = vrot.slane %v1182_v52, 1 }
 0x2be   :  { %v1170_v48 = vadd.f32 %v1169_v30, %v1168_v56 }
 0x2bf   :  { %v1184_v62 = vadd.f32 %v1183_v43, %v1182_v52 }
 0x2cf   :  { %v1044_v14 = vpop.permute.xlu2 %1043 }
 0x2d0   :  { %v1101_v6 = vmul.f32 %v1556_v3, %v1044_v14 }
 0x2d2   :  { %v1283_v10 = vsel %vm229_vm0, %v1101_v6, 0.0 }
 0x2d3   :  { %v1284_v41 = vrot.slane %v1283_v10, 4 }
 0x2d5   :  { %v1285_v4 = vadd.f32 %v1284_v41, %v1283_v10  ;;  %v1567_v41 = vld [vmem:[#allocation5 + $0xa0] sm:$0xff] }
 0x2d7   :  { %v1049_v60 = vpop.permute.xlu2 %1048  ;;  %v1286_v1 = vrot.slane %v1285_v4, 2 }
 0x2d8   :  { %v1102_v51 = vmul.f32 %v1559_v31, %v1049_v60  ;;  %v1562_v60 = vld [vmem:[#allocation5 + $0x90] sm:$0xff]  ;;  %v1566_v31 = vld [vmem:[#allocation5 + $0xe0] sm:$0xff] }
 0x2d9   :  { %v999_v59 = vpop.permute.xlu1 %998  ;;  %v1004_v26 = vpop.permute.xlu0 %1003  ;;  %v1287_v8 = vadd.f32 %v1286_v1, %v1285_v4 }
 0x2da   :  { %v1092_v5 = vmul.f32 %v1557_v12, %v999_v59  ;;  %v1093_v63 = vmul.f32 %v1558_v45, %v1004_v26  ;;  %v1290_v37 = vsel %vm229_vm0, %v1102_v51, 0.0  ;;  %v1564_v26 = vld [vmem:[#allocation5 + $0xc0] sm:$0xff]  ;;  %v1565_v45 = vld [vmem:[#allocation5 + $0x98] sm:$0xff] }
 0x2db   :  { %v1291_v58 = vrot.slane %v1290_v37, 4  ;;  %v1288_v32 = vrot.slane %v1287_v8, 1 }
 0x2dc   :  { %v1220_v33 = vsel %vm229_vm0, %v1092_v5, 0.0  ;;  %v1227_v24 = vsel %vm229_vm0, %v1093_v63, 0.0 }
 0x2dd   :  { %v1221_v36 = vrot.slane %v1220_v33, 4  ;;  %v1228_v29 = vrot.slane %v1227_v24, 4  ;;  %v1292_v16 = vadd.f32 %v1291_v58, %v1290_v37  ;;  %v2197_v30 = vadd.f32 %v1288_v32, %v1287_v8 }
 0x2df   :  { %v1054_v54 = vpop.permute.xlu2 %1053  ;;  %v1222_v27 = vadd.f32 %v1221_v36, %v1220_v33  ;;  %v1229_v25 = vadd.f32 %v1228_v29, %v1227_v24  ;;  %v1293_v57 = vrot.slane %v1292_v16, 2  ;;  %v1191_v24 = vadd.f32 %v1190_v20, %v1189_v47 }
 0x2e0   :  { %v1103_v42 = vmul.f32 %v1561_v61, %v1054_v54  ;;  %v1356_v54 = vsel %vm392_vm1, %v1177_v0, %v1170_v48 }
 0x2e1   :  { %v1009_v34 = vpop.permute.xlu1 %1008  ;;  %v1223_v9 = vrot.slane %v1222_v27, 2  ;;  %v1230_v11 = vrot.slane %v1229_v25, 2  ;;  %v2193_v23 = vadd.f32 %v1293_v57, %v1292_v16  ;;  %v1572_v57 = vld [vmem:[#allocation5 + $0x78] sm:$0xff] }
 0x2e2   :  { %v1094_v38 = vmul.f32 %v1562_v60, %v1009_v34  ;;  %v1297_v18 = vsel %vm229_vm0, %v1103_v42, 0.0 }
 0x2e3   :  { %v1224_v40 = vadd.f32 %v1223_v9, %v1222_v27  ;;  %v1231_v12 = vadd.f32 %v1230_v11, %v1229_v25  ;;  %v1298_v5 = vrot.slane %v1297_v18, 4  ;;  %v1295_v42 = vrot.slane %v2193_v23, 1 }
 0x2e4   :  { %v1234_v49 = vsel %vm229_vm0, %v1094_v38, 0.0 }
 0x2e5   :  { %v1235_v13 = vrot.slane %v1234_v49, 4  ;;  %v1232_v37 = vrot.slane %v1231_v12, 1  ;;  %v1299_v36 = vadd.f32 %v1298_v5, %v1297_v18 }
 0x2e7   :  { %v1039_v15 = vpop.permute.xlu0 %1038  ;;  %v1059_v22 = vpop.permute.xlu2 %1058  ;;  %v1236_v58 = vadd.f32 %v1235_v13, %v1234_v49  ;;  %v1233_v16 = vadd.f32 %v1232_v37, %v1231_v12  ;;  %v1300_v60 = vrot.slane %v1299_v36, 2 }
 0x2e8   :  { %v1100_v19 = vmul.f32 %v1564_v26, %v1039_v15  ;;  %v1104_v51 = vmul.f32 %v1566_v31, %v1059_v22  ;;  %v1357_v15 = vsel %vm394_vm2, %v1184_v62, %v1356_v54  ;;  %v1571_v62 = vld [vmem:[#allocation5 + $0xf8] sm:$0xff] }
 0x2e9   :  { %v979_v50 = vpop.permute.xlu1 %978  ;;  %v2201_v25 = vsel %vm396_vm3, %v1191_v24, %v1357_v15  ;;  %v1237_v11 = vrot.slane %v1236_v58, 2 }
 0x2ea   :  { %v1088_v39 = vmul.f32 %v1560_v35, %v979_v50  ;;  %v1276_v46 = vsel %vm229_vm0, %v1100_v19, 0.0  ;;  %v1225_v50 = vrot.slane %v1224_v40, 1  ;;  %v1304_v27 = vsel %vm229_vm0, %v1104_v51, 0.0 }
 0x2eb   :  { %v1277_v44 = vrot.slane %v1276_v46, 4 }
 0x2ec   :  { %v1192_v59 = vsel %vm229_vm0, %v1088_v39, 0.0  ;;  %v1569_v39 = vld [vmem:[#allocation5 + $0xe8] sm:$0xff] }
 0x2ed   :  { %v1193_v34 = vrot.slane %v1192_v59, 4  ;;  %v1278_v38 = vadd.f32 %v1277_v44, %v1276_v46  ;;  %v2213_v46 = vadd.f32 %v1300_v60, %v1299_v36 }
 0x2ef   :  { %v1014_v14 = vpop.permute.xlu0 %1013  ;;  %v1064_v3 = vpop.permute.xlu2 %1063  ;;  %v1194_v55 = vadd.f32 %v1193_v34, %v1192_v59  ;;  %v1305_v59 = vrot.slane %v1304_v27, 4 }
 0x2f0   :  { %v1095_v63 = vmul.f32 %v1565_v45, %v1014_v14  ;;  %v1105_v2 = vmul.f32 %v1569_v39, %v1064_v3  ;;  %v1226_v14 = vadd.f32 %v1225_v50, %v1224_v40  ;;  %v1279_v40 = vrot.slane %v1278_v38, 2 }
 0x2f1   :  { %v984_v53 = vpop.permute.xlu1 %983  ;;  %v1195_v35 = vrot.slane %v1194_v55, 2  ;;  %v1238_v45 = vadd.f32 %v1237_v11, %v1236_v58 }
 0x2f2   :  { %v1089_v17 = vmul.f32 %v1563_v28, %v984_v53  ;;  %v1241_v29 = vsel %vm229_vm0, %v1095_v63, 0.0  ;;  %v1311_v18 = vsel %vm229_vm0, %v1105_v2, 0.0  ;;  %v2208_v34 = vsel %vm392_vm1, %v1233_v16, %v1226_v14 }
 0x2f3   :  { %v1242_v1 = vrot.slane %v1241_v29, 4  ;;  %v1196_v8 = vadd.f32 %v1195_v35, %v1194_v55  ;;  %v2210_v63 = vadd.f32 %v1305_v59, %v1304_v27  ;;  %v1280_v15 = vadd.f32 %v1279_v40, %v1278_v38 }
 0x2f4   :  { %v1199_v6 = vsel %vm229_vm0, %v1089_v17, 0.0  ;;  %v1570_v17 = vld [vmem:[#allocation5 + $0xa8] sm:$0xff] }
 0x2f5   :  { %v1200_v7 = vrot.slane %v1199_v6, 4  ;;  %v1243_v20 = vadd.f32 %v1242_v1, %v1241_v29  ;;  %v1239_v29 = vrot.slane %v1238_v45, 1  ;;  %v1307_v44 = vrot.slane %v2210_v63, 2 }
 0x2f7   :  { %v1019_v10 = vpop.permute.xlu0 %1018  ;;  %v1201_v4 = vadd.f32 %v1200_v7, %v1199_v6  ;;  %v1074_v47 = vpop.permute.xlu2 %1073  ;;  %v1244_v13 = vrot.slane %v1243_v20, 2  ;;  %v1240_v60 = vadd.f32 %v1239_v29, %v1238_v45 }
 0x2f8   :  { %v1096_v33 = vmul.f32 %v1567_v41, %v1019_v10  ;;  %v1107_v26 = vmul.f32 %v1571_v62, %v1074_v47  ;;  %v1312_v10 = vrot.slane %v1311_v18, 4  ;;  %v1197_v41 = vrot.slane %v1196_v8, 1 }
 0x2f9   :  { %v989_v56 = vpop.permute.xlu1 %988  ;;  %v1202_v53 = vrot.slane %v1201_v4, 2  ;;  %v1245_v58 = vadd.f32 %v1244_v13, %v1243_v20  ;;  %v1281_v47 = vrot.slane %v1280_v15, 1 }
 0x2fa   :  { %v1248_v22 = vsel %vm229_vm0, %v1096_v33, 0.0  ;;  %v1090_v52 = vmul.f32 %v1568_v21, %v989_v56  ;;  %v1325_v33 = vsel %vm229_vm0, %v1107_v26, 0.0  ;;  %v1198_v39 = vadd.f32 %v1197_v41, %v1196_v8 }
 0x2fb   :  { %v1249_v43 = vrot.slane %v1248_v22, 4  ;;  %v1203_v12 = vadd.f32 %v1202_v53, %v1201_v4  ;;  %v1326_v27 = vrot.slane %v1325_v33, 4  ;;  %v1246_v59 = vrot.slane %v1245_v58, 1 }
 0x2fc   :  { %v1206_v61 = vsel %vm229_vm0, %v1090_v52, 0.0  ;;  %v1313_v52 = vadd.f32 %v1312_v10, %v1311_v18  ;;  %v1359_v20 = vsel %vm398_vm4, %v1198_v39, %v2201_v25  ;;  %v1282_v62 = vadd.f32 %v1281_v47, %v1280_v15 }
 0x2fd   :  { %v1207_v48 = vrot.slane %v1206_v61, 4  ;;  %v1250_v3 = vadd.f32 %v1249_v43, %v1248_v22  ;;  %v1204_v55 = vrot.slane %v1203_v12, 1  ;;  %v1573_v22 = vld [vmem:[#allocation5 + $0xb0] sm:$0xff]  ;;  %v1247_v45 = vadd.f32 %v1246_v59, %v1245_v58  ;;  %v1419_v59 = vld [vmem:[#allocation7 + $0x60] sm:$0xff] }
 0x2fe   :  { %v1314_v11 = vrot.slane %v1313_v52, 2  ;;  %v1308_v41 = vadd.f32 %v1307_v44, %v2210_v63  ;;  %v1375_v15 = vsel %vm394_vm2, %v1240_v60, %v2208_v34 }
 0x2ff   :  { %v1024_v9 = vpop.permute.xlu0 %1023  ;;  %v1208_v28 = vadd.f32 %v1207_v48, %v1206_v61  ;;  %v1251_v24 = vrot.slane %v1250_v3, 2  ;;  %v1574_v61 = vld [vmem:[#allocation5 + $0xb8] sm:$0xff]  ;;  %v1205_v43 = vadd.f32 %v1204_v55, %v1203_v12  ;;  %v1392_v55 = vsel %vm392_vm1, %v2197_v30, %v1282_v62 }
 0x300   :  { %v1097_v0 = vmul.f32 %v1570_v17, %v1024_v9  ;;  %v1309_v58 = vrot.slane %v1308_v41, 1  ;;  %v1414_v62 = vld [vmem:[#allocation7 + $0x38] sm:$0xff] }
 0x301   :  { %v994_v19 = vpop.permute.xlu1 %993  ;;  %v1209_v6 = vrot.slane %v1208_v28, 2  ;;  %v1252_v2 = vadd.f32 %v1251_v24, %v1250_v3 }
 0x302   :  { %v1255_v54 = vsel %vm229_vm0, %v1097_v0, 0.0  ;;  %v1091_v49 = vmul.f32 %v1572_v57, %v994_v19 }
 0x303   :  { %v1256_v5 = vrot.slane %v1255_v54, 4  ;;  %v1210_v32 = vadd.f32 %v1209_v6, %v1208_v28  ;;  %v1327_v28 = vadd.f32 %v1326_v27, %v1325_v33  ;;  %v1253_v0 = vrot.slane %v1252_v2, 1 }
 0x304   :  { %v1213_v7 = vsel %vm229_vm0, %v1091_v49, 0.0  ;;  %v1360_v6 = vsel %vm400_vm5, %v1205_v43, %v1359_v20  ;;  %v1575_v49 = vld [vmem:[#allocation5 + $0xf0] sm:$0xff] }
 0x305   :  { %v1257_v31 = vadd.f32 %v1256_v5, %v1255_v54  ;;  %v1214_v51 = vrot.slane %v1213_v7, 4  ;;  %v1211_v4 = vrot.slane %v1210_v32, 1  ;;  %v1315_v5 = vadd.f32 %v1314_v11, %v1313_v52  ;;  %v1420_v11 = vld [vmem:[#allocation7 + $0x68] sm:$0xff] }
 0x306   :  { %v1254_v10 = vadd.f32 %v1253_v0, %v1252_v2  ;;  %v1416_v0 = vld [vmem:[#allocation7 + $0x48] sm:$0xff] }
 0x307   :  { %v1258_v56 = vrot.slane %v1257_v31, 2  ;;  %v1215_v50 = vadd.f32 %v1214_v51, %v1213_v7  ;;  %v1029_v37 = vpop.permute.xlu0 %1028  ;;  %v1212_v38 = vadd.f32 %v1211_v4, %v1210_v32  ;;  %v1328_v32 = vrot.slane %v1327_v28, 2 }
 0x308   :  { %v1098_v21 = vmul.f32 %v1573_v22, %v1029_v37  ;;  %v1302_v51 = vrot.slane %v2213_v46, 1  ;;  %v1296_v37 = vadd.f32 %v1295_v42, %v2193_v23  ;;  %v1316_v29 = vrot.slane %v1315_v5, 1 }
 0x309   :  { %v1216_v36 = vrot.slane %v1215_v50, 2  ;;  %v1034_v35 = vpop.permute.xlu1 %1033  ;;  %v1259_v48 = vadd.f32 %v1258_v56, %v1257_v31  ;;  %v1361_v12 = vsel %vm402_vm6, %v1212_v38, %v1360_v6  ;;  %v1376_v22 = vsel %vm396_vm3, %v1247_v45, %v1375_v15  ;;  %v929_v6 = vpop.permute.xlu2 %928 }
 0x30a   :  { %v1262_v1 = vsel %vm229_vm0, %v1098_v21, 0.0  ;;  %v1099_v14 = vmul.f32 %v1574_v61, %v1034_v35  ;;  %v1329_v21 = vadd.f32 %v1328_v32, %v1327_v28  ;;  %v1377_v52 = vsel %vm398_vm4, %v1254_v10, %v1376_v22  ;;  %v1418_v28 = vld [vmem:[#allocation7 + $0x58] sm:$0xff]  ;;  %v1578_v32 = vld [vmem:[#allocation5 + $0x10] sm:$0xff] }
 0x30b   :  { %v1217_v16 = vadd.f32 %v1216_v36, %v1215_v50  ;;  %v1263_v53 = vrot.slane %v1262_v1, 4  ;;  %v1260_v26 = vrot.slane %v1259_v48, 1  ;;  %v1393_v30 = vsel %vm394_vm2, %v1296_v37, %v1392_v55  ;;  %v1409_v37 = vld [vmem:[#allocation7 + $0x10] sm:$0xff] }
 0x30c   :  { %v1269_v9 = vsel %vm229_vm0, %v1099_v14, 0.0  ;;  %v1303_v36 = vadd.f32 %v1302_v51, %v2213_v46  ;;  %v1317_v39 = vadd.f32 %v1316_v29, %v1315_v5  ;;  %v1330_v2 = vrot.slane %v1329_v21, 1  ;;  %v1580_v51 = vld [vmem:[#allocation5 + $0x20] sm:$0xff] }
 0x30d   :  { %v1218_v17 = vrot.slane %v1217_v16, 1  ;;  %v1264_v8 = vadd.f32 %v1263_v53, %v1262_v1  ;;  %v1270_v18 = vrot.slane %v1269_v9, 4  ;;  %v1261_v33 = vadd.f32 %v1260_v26, %v1259_v48  ;;  %v1422_v53 = vld [vmem:[#allocation7 + $0x78] sm:$0xff]  ;;  %v1413_v26 = vld [vmem:[#allocation7 + $0x30] sm:$0xff] }
 0x30e   :  { %v1394_v61 = vsel %vm396_vm3, %v1303_v36, %v1393_v30  ;;  %v1310_v14 = vadd.f32 %v1309_v58, %v1308_v41  ;;  %1427 = vmatpush.msra.mxu0 %v1422_v53 }
 0x30f   :  { %v1069_v19 = vpop.permute.xlu0 %1068  ;;  %v1219_v3 = vadd.f32 %v1218_v17, %v1217_v16  ;;  %v1265_v54 = vrot.slane %v1264_v8, 2  ;;  %v1271_v57 = vadd.f32 %v1270_v18, %v1269_v9  ;;  %v1378_v27 = vsel %vm400_vm5, %v1261_v33, %v1377_v52  ;;  %v1421_v9 = vld [vmem:[#allocation7 + $0x70] sm:$0xff]  ;;  %v1408_v52 = vld [vmem:[#allocation7 + $0x8] sm:$0xff] }
 0x310   :  { %v1106_v40 = vmul.f32 %v1575_v49, %v1069_v19  ;;  %v1395_v48 = vsel %vm398_vm4, %v1310_v14, %v1394_v61  ;;  %v1331_v16 = vadd.f32 %v1330_v2, %v1329_v21  ;;  %1428 = vmatpush.msra.mxu0 %v1421_v9  ;;  %v1417_v17 = vld [vmem:[#allocation7 + $0x50] sm:$0xff]  ;;  %v1412_v19 = vld [vmem:[#allocation7 + $0x28] sm:$0xff] }
 0x311   :  { %v1362_v7 = vsel %vm404_vm7, %v1219_v3, %v1361_v12  ;;  %v1266_v13 = vadd.f32 %v1265_v54, %v1264_v8  ;;  %v1272_v25 = vrot.slane %v1271_v57, 2  ;;  %v1396_v46 = vsel %vm400_vm5, %v1317_v39, %v1395_v48  ;;  %v1415_v8 = vld [vmem:[#allocation7 + $0x40] sm:$0xff]  ;;  %v919_v18 = vpop.permute.xlu1 %918  ;;  %v1576_v54 = vld [vmem:[#allocation5 + $0x8] sm:$0xff] }
 0x312   :  { %v1318_v31 = vsel %vm229_vm0, %v1106_v40, 0.0  ;;  %1363 = vrot.lane.b32.xlu2 %v1362_v7, %s1692_s0  ;;  %1429 = vmatpush.msra.mxu0 %v1420_v11  ;;  %v1411_v3 = vld [vmem:[#allocation7 + $0x20] sm:$0xff]  ;;  %v1078_v7 = vmul.f32 %v1578_v32, %v929_v6 }
 0x313   :  { %v1319_v24 = vrot.slane %v1318_v31, 4  ;;  %v1267_v56 = vrot.slane %v1266_v13, 1  ;;  %v1273_v50 = vadd.f32 %v1272_v25, %v1271_v57  ;;  %v1577_v12 = vld [vmem:[#allocation5] sm:$0xff] }
 0x314   :  { %1430 = vmatpush.msra.mxu0 %v1419_v59  ;;  %v1076_v5 = vmul.f32 %v1577_v12, %v919_v18  ;;  %v1122_v33 = vsel %vm229_vm0, %v1078_v7, 0.0  ;;  %v1407_v39 = vld [vmem:[#allocation7] sm:$0xff] }
 0x315   :  { %v1320_v4 = vadd.f32 %v1319_v24, %v1318_v31  ;;  %v1268_v63 = vadd.f32 %v1267_v56, %v1266_v13  ;;  %v1274_v44 = vrot.slane %v1273_v50, 1  ;;  %v1579_v13 = vld [vmem:[#allocation5 + $0x18] sm:$0xff]  ;;  %v944_v24 = vpop.permute.xlu2 %943  ;;  %v1123_v21 = vrot.slane %v1122_v33, 4 }
 0x316   :  { %1431 = vmatpush.msra.mxu0 %v1418_v28  ;;  %v1108_v10 = vsel %vm229_vm0, %v1076_v5, 0.0 }
 0x317   :  { %v1321_v34 = vrot.slane %v1320_v4, 2  ;;  %v1275_v35 = vadd.f32 %v1274_v44, %v1273_v50  ;;  %v1379_v23 = vsel %vm402_vm6, %v1268_v63, %v1378_v27  ;;  %v924_v20 = vpop.permute.xlu0 %923  ;;  %v1109_v15 = vrot.slane %v1108_v10, 4  ;;  %v1410_v50 = vld [vmem:[#allocation7 + $0x18] sm:$0xff]  ;;  %v1581_v63 = vld [vmem:[#allocation5 + $0x28] sm:$0xff]  ;;  %v1582_v27 = vld [vmem:[#allocation5 + $0x30] sm:$0xff] }
 0x318   :  { %1432 = vmatpush.msra.mxu0 %v1417_v17  ;;  %v1077_v57 = vmul.f32 %v1576_v54, %v924_v20  ;;  %v1081_v44 = vmul.f32 %v1581_v63, %v944_v24  ;;  %v1124_v2 = vadd.f32 %v1123_v21, %v1122_v33 }
 0x319   :  { %v1322_v42 = vadd.f32 %v1321_v34, %v1320_v4  ;;  %v1380_v1 = vsel %vm404_vm7, %v1275_v35, %v1379_v23  ;;  %v934_v49 = vpop.permute.xlu1 %933  ;;  %v1110_v58 = vadd.f32 %v1109_v15, %v1108_v10  ;;  %v1583_v35 = vld [vmem:[#allocation5 + $0x38] sm:$0xff] }
 0x31a   :  { %1381 = vrot.lane.b32.xlu1 %v1380_v1, %s1693_s2  ;;  %1433 = vmatpush.msra.mxu0 %v1416_v0  ;;  %v1115_v45 = vsel %vm229_vm0, %v1077_v57, 0.0  ;;  %v1079_v25 = vmul.f32 %v1579_v13, %v934_v49  ;;  %v1143_v1 = vsel %vm229_vm0, %v1081_v44, 0.0 }
 0x31b   :  { %v1323_v47 = vrot.slane %v1322_v42, 1  ;;  %v1116_v31 = vrot.slane %v1115_v45, 4  ;;  %v1111_v61 = vrot.slane %v1110_v58, 2 }
 0x31c   :  { %1434 = vmatpush.msra.mxu0 %v1415_v8  ;;  %v1129_v55 = vsel %vm229_vm0, %v1079_v25, 0.0 }
 0x31d   :  { %v1324_v43 = vadd.f32 %v1323_v47, %v1322_v42  ;;  %v1117_v29 = vadd.f32 %v1116_v31, %v1115_v45  ;;  %v1130_v34 = vrot.slane %v1129_v55, 4  ;;  %v1112_v53 = vadd.f32 %v1111_v61, %v1110_v58 }
 0x31e   :  { %1435 = vmatpush.msra.mxu0 %v1414_v62 }
 0x31f   :  { %v1397_v60 = vsel %vm402_vm6, %v1324_v43, %v1396_v46  ;;  %v939_v40 = vpop.permute.xlu0 %938  ;;  %v1118_v42 = vrot.slane %v1117_v29, 2  ;;  %v1131_v14 = vadd.f32 %v1130_v34, %v1129_v55  ;;  %v1113_v18 = vrot.slane %v1112_v53, 1  ;;  %v1479_v34 = vld [vmem:[%s2271_s3] ss:$0 sm:$0xff] }
 0x320   :  { %v1398_v38 = vsel %vm404_vm7, %v1331_v16, %v1397_v60  ;;  %1436 = vmatpush.msra.mxu0 %v1413_v26  ;;  %v1080_v41 = vmul.f32 %v1580_v51, %v939_v40  ;;  %v1144_v16 = vrot.slane %v1143_v1, 4  ;;  %v1125_v60 = vrot.slane %v1124_v2, 2 }
 0x321   :  { %1399 = vrot.lane.b32.xlu0 %v1398_v38, %s1694_s5  ;;  %v949_v56 = vpop.permute.xlu1 %948  ;;  %v1119_v46 = vadd.f32 %v1118_v42, %v1117_v29  ;;  %v1132_v9 = vrot.slane %v1131_v14, 2  ;;  %v1114_v57 = vadd.f32 %v1113_v18, %v1112_v53 }
 0x322   :  { %1437 = vmatpush.msra.mxu0 %v1412_v19  ;;  %v1136_v4 = vsel %vm229_vm0, %v1080_v41, 0.0  ;;  %v1082_v30 = vmul.f32 %v1582_v27, %v949_v56  ;;  %v1145_v28 = vadd.f32 %v1144_v16, %v1143_v1  ;;  %v1126_v0 = vadd.f32 %v1125_v60, %v1124_v2 }
 0x323   :  { %v1137_v36 = vrot.slane %v1136_v4, 4  ;;  %v1120_v17 = vrot.slane %v1119_v46, 1  ;;  %v1133_v20 = vadd.f32 %v1132_v9, %v1131_v14 }
 0x324   :  { %1438 = vmatpush.msra.mxu0 %v1411_v3  ;;  %v1150_v47 = vsel %vm229_vm0, %v1082_v30, 0.0  ;;  %v1146_v19 = vrot.slane %v1145_v28, 2  ;;  %v1127_v6 = vrot.slane %v1126_v0, 1 }
 0x325   :  { %v1138_v43 = vadd.f32 %v1137_v36, %v1136_v4  ;;  %v1151_v38 = vrot.slane %v1150_v47, 4  ;;  %v1121_v3 = vadd.f32 %v1120_v17, %v1119_v46  ;;  %v1134_v49 = vrot.slane %v1133_v20, 1 }
 0x326   :  { %1439 = vmatpush.msra.mxu0 %v1410_v50  ;;  %v1147_v5 = vadd.f32 %v1146_v19, %v1145_v28  ;;  %v1128_v32 = vadd.f32 %v1127_v6, %v1126_v0 }
 0x327   :  { %v954_v22 = vpop.permute.xlu0 %953  ;;  %v1139_v59 = vrot.slane %v1138_v43, 2  ;;  %v1152_v8 = vadd.f32 %v1151_v38, %v1150_v47  ;;  %v1340_v45 = vsel %vm392_vm1, %v1121_v3, %v1114_v57  ;;  %v1135_v10 = vadd.f32 %v1134_v49, %v1133_v20 }
 0x328   :  { %1440 = vmatpush.msra.mxu0 %v1409_v37  ;;  %v1083_v23 = vmul.f32 %v1583_v35, %v954_v22  ;;  %v1341_v25 = vsel %vm394_vm2, %v1128_v32, %v1340_v45  ;;  %v1148_v51 = vrot.slane %v1147_v5, 1 }
 0x329   :  { %v1140_v26 = vadd.f32 %v1139_v59, %v1138_v43  ;;  %v1153_v54 = vrot.slane %v1152_v8, 2  ;;  %v1342_v33 = vsel %vm396_vm3, %v1135_v10, %v1341_v25 }
 0x32a   :  { %1441 = vmatpush.msra.mxu0 %v1408_v52  ;;  %v1157_v48 = vsel %vm229_vm0, %v1083_v23, 0.0  ;;  %v1149_v55 = vadd.f32 %v1148_v51, %v1147_v5 }
 0x32b   :  { %v1158_v11 = vrot.slane %v1157_v48, 4  ;;  %v1141_v12 = vrot.slane %v1140_v26, 1  ;;  %v1154_v7 = vadd.f32 %v1153_v54, %v1152_v8 }
 0x32c   :  { %1442 = vmatpush.msra.mxu0 %v1407_v39 }
 0x32d   :  { %v1159_v62 = vadd.f32 %v1158_v11, %v1157_v48  ;;  %v1142_v31 = vadd.f32 %v1141_v12, %v1140_v26  ;;  %v1155_v41 = vrot.slane %v1154_v7, 1 }
 0x32f   :  { %v1160_v40 = vrot.slane %v1159_v62, 2  ;;  %v1343_v15 = vsel %vm398_vm4, %v1142_v31, %v1342_v33  ;;  %v1156_v56 = vadd.f32 %v1155_v41, %v1154_v7 }
 0x330   :  { %v1344_v37 = vsel %vm400_vm5, %v1149_v55, %v1343_v15 }
 0x331   :  { %v1161_v13 = vadd.f32 %v1160_v40, %v1159_v62  ;;  %v1345_v4 = vsel %vm402_vm6, %v1156_v56, %v1344_v37 }
 0x333   :  { %v1162_v24 = vrot.slane %v1161_v13, 1 }
 0x335   :  { %v1163_v50 = vadd.f32 %v1162_v24, %v1161_v13 }
 0x337   :  { %v1346_v21 = vsel %vm404_vm7, %v1163_v50, %v1345_v4 }
 0x36c   :  { %v1364_v29 = vpop.permute.xlu2 %1363 }
 0x36d   :  { %v1402_v63 = vsel %vm229_vm0, %v1346_v21, %v1364_v29 }
 0x38c   :  { %v1382_v22 = vpop.permute.xlu1 %1381 }
 0x38d   :  { %v1404_v44 = vsel %vm1403_vm9, %v1402_v63, %v1382_v22 }
 0x393   :  { %v1400_v52 = vpop.permute.xlu0 %1399 }
 0x394   :  { %v1406_v58 = vsel %vm1405_vm10, %v1404_v44, %v1400_v52 }
 0x395   :  { %1443 = vmatmul.f32.vlgmr.msra.gmra.mxu0 %v1406_v58 }
 0x412   :  { %v1444_v27 = vpop.f32.mrf.mxu0 }
 0x413   :  { %v1445_v30 = vadd.f32 %v1479_v34, %v1444_v27 }
 0x415   :  { %1447 = vst [vmem:[#allocation8] sm:$0xff] %v1445_v30 }
 0x416   :  { %1458 = dma.vmem_to_hbm [thread:$0]  %s1454_s9, 128, %s1456_s12, [#allocation4]  }
 0x417   :  { %1684 = dma.done.wait [#allocation4], 128  }
 0x418   :  { %1685 = vsyncadd [#allocation4], 4294967168 }
 0x419   :  { %1463 = vsyncpa [#allocation3], 1 }
 0x41a   :  { %1464 = vsyncpa [#allocation6], 1 }
 0x41b   :  { %1465 = vsyncpa [#allocation4], 1 }

</bundles_post_ra>
